<compile_context>
chip_gen: v6e
topology: v6e:2x2x1
jax: 0.10.0
libtpu: 0.0.40
codegen_flags: <defaults>
</compile_context>

<pallas_src>
import functools

import jax
import jax.numpy as jnp
import numpy as np
from jax.experimental import pallas as pl
from jax.experimental.pallas import tpu as pltpu


def _group_kernel(xyz_ref, neigh_ref, center_ref, *, G, K):
    """Per-batch Group forward.

    xyz_ref:    (3, N)     lane-dense input points for this batch
    neigh_ref:  (3, G, K)  output neighborhoods (center-subtracted, transposed)
    center_ref: (G, 3)     output FPS centers
    """
    N = xyz_ref.shape[1]
    xyz = xyz_ref[...].astype(jnp.float32)          # (3, N)
    xr = xyz[0:1, :]                                # (1, N)
    yr = xyz[1:2, :]
    zr = xyz[2:3, :]

    # ---- hoisted iotas / constants (JAX does not CSE broadcasts in loops)
    lane_iota = jax.lax.broadcasted_iota(jnp.int32, (1, N), 1)   # point ids
    g_col_iota = jax.lax.broadcasted_iota(jnp.int32, (G, 1), 0)  # group ids
    gn_iota = jax.lax.broadcasted_iota(jnp.int32, (G, N), 1)     # point ids / row
    k_iota = jax.lax.broadcasted_iota(jnp.int32, (1, K), 1)      # knn slot ids
    coord3 = jax.lax.broadcasted_iota(jnp.int32, (1, 3), 1)
    ex = (coord3 == 0).astype(jnp.float32)
    ey = (coord3 == 1).astype(jnp.float32)
    ez = (coord3 == 2).astype(jnp.float32)

    # ---------------- Furthest Point Sampling (matches pointnet2 CUDA impl:
    # first selected index is 0, then iteratively argmax of min-distance).
    # Centers (G, 3) are accumulated directly in the loop carry.
    def fps_body(g, carry):
        min_dist, centers, sel = carry                     # (1,N), (G,3), (1,1)
        cur = (lane_iota == sel).astype(jnp.float32)       # (1, N) one-hot of sel
        # exact gather of the selected point (single nonzero term per sum)
        px = jnp.sum(xr * cur, axis=1, keepdims=True)      # (1, 1)
        py = jnp.sum(yr * cur, axis=1, keepdims=True)
        pz = jnp.sum(zr * cur, axis=1, keepdims=True)
        point_row = px * ex + py * ey + pz * ez            # (1, 3)
        gmask = (g_col_iota == g).astype(jnp.float32)      # (G, 1)
        centers = centers + gmask * point_row              # record row g
        d = (xr - px) ** 2 + (yr - py) ** 2 + (zr - pz) ** 2   # (1, N)
        min_dist = jnp.minimum(min_dist, d)
        # argmax with first-occurrence tie-break
        max_val = jnp.max(min_dist, axis=1, keepdims=True)     # (1, 1)
        sel = jnp.min(jnp.where(min_dist == max_val, lane_iota, N),
                      axis=1, keepdims=True).astype(jnp.int32)  # (1, 1)
        return (min_dist, centers, sel)

    init = (jnp.full((1, N), 1e10, jnp.float32),
            jnp.zeros((G, 3), jnp.float32),
            jnp.zeros((1, 1), jnp.int32))
    _, centers, _ = jax.lax.fori_loop(0, G, fps_body, init)

    cx = centers[:, 0:1]                                   # (G, 1)
    cy = centers[:, 1:2]
    cz = centers[:, 2:3]

    # ---------------- pairwise squared distances centers -> every point,
    # lane-dense (G, N) via |c|^2 + |p|^2 - 2 c.p (f32 VPU outer products).
    pp = xr * xr + yr * yr + zr * zr                       # (1, N)
    cc = cx * cx + cy * cy + cz * cz                       # (G, 1)
    cp = cx * xr + cy * yr + cz * zr                       # (G, N)
    D = cc + pp - 2.0 * cp                                 # (G, N)

    # ---------------- iterative K nearest neighbors (ascending distance,
    # first-occurrence tie-break), gather + recenter fused into the loop.
    big = jnp.float32(1e30)
    ax = jnp.zeros((G, K), jnp.float32)
    ay = jnp.zeros((G, K), jnp.float32)
    az = jnp.zeros((G, K), jnp.float32)
    Dc = D
    for k in range(K):                                     # K small & static: unrolled
        min_val = jnp.min(Dc, axis=1, keepdims=True)       # (G, 1)
        idx = jnp.min(jnp.where(Dc == min_val, gn_iota, N),
                      axis=1, keepdims=True)               # (G, 1) first occurrence
        onehot = (gn_iota == idx).astype(jnp.float32)      # (G, N)
        gx = jnp.sum(onehot * xr, axis=1, keepdims=True)   # (G, 1) exact gather
        gy = jnp.sum(onehot * yr, axis=1, keepdims=True)
        gz = jnp.sum(onehot * zr, axis=1, keepdims=True)
        kmask = (k_iota == k).astype(jnp.float32)          # (1, K) slot k
        ax = ax + (gx - cx) * kmask
        ay = ay + (gy - cy) * kmask
        az = az + (gz - cz) * kmask
        Dc = jnp.where(onehot > 0.0, big, Dc)              # mask picked point

    neigh_ref[0, :, :] = ax.astype(neigh_ref.dtype)
    neigh_ref[1, :, :] = ay.astype(neigh_ref.dtype)
    neigh_ref[2, :, :] = az.astype(neigh_ref.dtype)
    center_ref[...] = centers.astype(center_ref.dtype)


def group_forward(xyz, num_group, group_size):
    """Pallas version of Group.forward: xyz (B, N, 3) -> (neighborhood, center)."""
    B, N, C = xyz.shape
    assert C == 3
    G, K = num_group, group_size
    xyz_t = jnp.transpose(xyz, (0, 2, 1))                  # (B, 3, N) lane-dense
    kernel = functools.partial(_group_kernel, G=G, K=K)
    neigh_t, center = pl.pallas_call(
        kernel,
        out_shape=(jax.ShapeDtypeStruct((B, 3, G, K), xyz.dtype),
                   jax.ShapeDtypeStruct((B, G, 3), xyz.dtype)),
        grid=(B,),
        in_specs=[pl.BlockSpec((None, 3, N), lambda b: (b, 0, 0))],
        out_specs=(pl.BlockSpec((None, 3, G, K), lambda b: (b, 0, 0, 0)),
                   pl.BlockSpec((None, G, 3), lambda b: (b, 0, 0))),
        compiler_params=pltpu.CompilerParams(
            dimension_semantics=("parallel",)),            # batches independent
    )(xyz_t)
    neighborhood = jnp.transpose(neigh_t, (0, 2, 3, 1))    # (B, G, K, 3)
    return neighborhood, center


# ---------------- pure-JAX reference (same FPS / KNN semantics) ----------------
def group_reference(xyz, G, K):
    def per_batch(pts):
        N = pts.shape[0]
        xs = pts[:, 0][None, :]                            # (1, N)
        ys = pts[:, 1][None, :]
        zs = pts[:, 2][None, :]

        def fps_body(g, carry):
            min_d, idxs, sel = carry
            idxs = idxs.at[g].set(sel)
            px = xs[0, sel]
            py = ys[0, sel]
            pz = zs[0, sel]
            d = (xs - px) ** 2 + (ys - py) ** 2 + (zs - pz) ** 2
            min_d = jnp.minimum(min_d, d)
            return (min_d, idxs, jnp.argmax(min_d[0]).astype(jnp.int32))

        _, idxs, _ = jax.lax.fori_loop(
            0, G, fps_body,
            (jnp.full((1, N), 1e10, jnp.float32),
             jnp.zeros((G,), jnp.int32), jnp.int32(0)))
        centers = pts[idxs]                                # (G, 3)
        cx = centers[:, 0:1]
        cy = centers[:, 1:2]
        cz = centers[:, 2:3]
        pp = xs * xs + ys * ys + zs * zs
        cc = cx * cx + cy * cy + cz * cz
        cp = cx * xs + cy * ys + cz * zs
        D = cc + pp - 2.0 * cp                             # (G, N)
        nbr = jnp.argsort(D, axis=-1)[:, :K]               # ascending, stable
        neigh = pts[nbr] - centers[:, None, :]
        return neigh, centers

    return jax.vmap(per_batch)(xyz)


if __name__ == "__main__":
    key = jax.random.PRNGKey(0)
    B, N = 2, 64
    num_group, group_size = 8, 8                           # G, K

    xyz = jax.random.normal(key, (B, N, 3), dtype=jnp.float32)

    neighborhood, center = group_forward(xyz, num_group, group_size)
    jax.block_until_ready((neighborhood, center))

    assert neighborhood.shape == (B, num_group, group_size, 3)
    assert center.shape == (B, num_group, 3)

    ref_n, ref_c = group_reference(xyz, num_group, group_size)
    assert np.allclose(np.asarray(center), np.asarray(ref_c), atol=1e-5)
    assert np.allclose(np.asarray(neighborhood), np.asarray(ref_n), atol=1e-5)

    print("KERNEL_OK")
</pallas_src>

<mosaic_0001>
module attributes {stable_mosaic.version = 11 : i64} {
  func.func @_group_kernel(%arg0: i32, %arg1: memref<1x3x64xf32, #tpu.memory_space<vmem>>, %arg2: memref<1x3x8x8xf32, #tpu.memory_space<vmem>>, %arg3: memref<1x8x3xf32, #tpu.memory_space<vmem>>) attributes {dimension_semantics = [#tpu.dimension_semantics<parallel>], iteration_bounds = array<i64: 2>, scalar_prefetch = 0 : i64, scratch_operands = 0 : i64, tpu.core_type = #tpu.core_type<tc>, window_params = [{transform_indices = @transform_0, window_bounds = array<i64: 1, 3, 64>}, {transform_indices = @transform_1, window_bounds = array<i64: 1, 3, 8, 8>}, {transform_indices = @transform_2, window_bounds = array<i64: 1, 8, 3>}]} {
    %c0 = arith.constant 0 : index
    %c0_0 = arith.constant 0 : index
    %c0_1 = arith.constant 0 : index
    %0 = vector.load %arg1[%c0, %c0_0, %c0_1] : memref<1x3x64xf32, #tpu.memory_space<vmem>>, vector<1x3x64xf32>
    %1 = vector.shape_cast %0 : vector<1x3x64xf32> to vector<3x64xf32>
    %2 = vector.extract_strided_slice %1 {offsets = [0, 0], sizes = [1, 64], strides = [1, 1]} : vector<3x64xf32> to vector<1x64xf32>
    %3 = vector.extract_strided_slice %1 {offsets = [1, 0], sizes = [1, 64], strides = [1, 1]} : vector<3x64xf32> to vector<1x64xf32>
    %4 = vector.extract_strided_slice %1 {offsets = [2, 0], sizes = [1, 64], strides = [1, 1]} : vector<3x64xf32> to vector<1x64xf32>
    %5 = tpu.iota {dimensions = array<i32: 1>} : vector<1x64xi32>
    %6 = tpu.iota {dimensions = array<i32: 0>} : vector<8x1xi32>
    %7 = tpu.iota {dimensions = array<i32: 1>} : vector<8x64xi32>
    %8 = tpu.iota {dimensions = array<i32: 1>} : vector<1x8xi32>
    %9 = tpu.iota {dimensions = array<i32: 1>} : vector<1x3xi32>
    %c0_i32 = arith.constant 0 : i32
    %10 = vector.broadcast %c0_i32 : i32 to vector<1x3xi32>
    %11 = arith.cmpi eq, %9, %10 : vector<1x3xi32>
    %12 = arith.extui %11 : vector<1x3xi1> to vector<1x3xi32>
    %13 = arith.sitofp %12 : vector<1x3xi32> to vector<1x3xf32>
    %c1_i32 = arith.constant 1 : i32
    %14 = vector.broadcast %c1_i32 : i32 to vector<1x3xi32>
    %15 = arith.cmpi eq, %9, %14 : vector<1x3xi32>
    %16 = arith.extui %15 : vector<1x3xi1> to vector<1x3xi32>
    %17 = arith.sitofp %16 : vector<1x3xi32> to vector<1x3xf32>
    %c2_i32 = arith.constant 2 : i32
    %18 = vector.broadcast %c2_i32 : i32 to vector<1x3xi32>
    %19 = arith.cmpi eq, %9, %18 : vector<1x3xi32>
    %20 = arith.extui %19 : vector<1x3xi1> to vector<1x3xi32>
    %21 = arith.sitofp %20 : vector<1x3xi32> to vector<1x3xf32>
    %cst = arith.constant 1.000000e+10 : f32
    %22 = vector.broadcast %cst : f32 to vector<1x64xf32>
    %cst_2 = arith.constant 0.000000e+00 : f32
    %23 = vector.broadcast %cst_2 : f32 to vector<8x3xf32>
    %c0_i32_3 = arith.constant 0 : i32
    %24 = vector.broadcast %c0_i32_3 : i32 to vector<1x1xi32>
    %c0_i32_4 = arith.constant 0 : i32
    %c8_i32 = arith.constant 8 : i32
    %25 = arith.addi %c0_i32_4, %c8_i32 : i32
    %c1_i32_5 = arith.constant 1 : i32
    %26:3 = scf.for %arg4 = %c0_i32_4 to %25 step %c1_i32_5 iter_args(%arg5 = %22, %arg6 = %23, %arg7 = %24) -> (vector<1x64xf32>, vector<8x3xf32>, vector<1x1xi32>)  : i32 {
      %444 = vector.broadcast %arg7 : vector<1x1xi32> to vector<1x64xi32>
      %445 = arith.cmpi eq, %5, %444 : vector<1x64xi32>
      %446 = arith.extui %445 : vector<1x64xi1> to vector<1x64xi32>
      %447 = arith.sitofp %446 : vector<1x64xi32> to vector<1x64xf32>
      %448 = arith.mulf %2, %447 : vector<1x64xf32>
      %cst_88 = arith.constant dense<0.000000e+00> : vector<1xf32>
      %449 = vector.multi_reduction <add>, %448, %cst_88 [1] : vector<1x64xf32> to vector<1xf32>
      %450 = vector.shape_cast %449 : vector<1xf32> to vector<1x1xf32>
      %451 = arith.mulf %3, %447 : vector<1x64xf32>
      %cst_89 = arith.constant dense<0.000000e+00> : vector<1xf32>
      %452 = vector.multi_reduction <add>, %451, %cst_89 [1] : vector<1x64xf32> to vector<1xf32>
      %453 = vector.shape_cast %452 : vector<1xf32> to vector<1x1xf32>
      %454 = arith.mulf %4, %447 : vector<1x64xf32>
      %cst_90 = arith.constant dense<0.000000e+00> : vector<1xf32>
      %455 = vector.multi_reduction <add>, %454, %cst_90 [1] : vector<1x64xf32> to vector<1xf32>
      %456 = vector.shape_cast %455 : vector<1xf32> to vector<1x1xf32>
      %457 = vector.broadcast %450 : vector<1x1xf32> to vector<1x3xf32>
      %458 = arith.mulf %457, %13 : vector<1x3xf32>
      %459 = vector.broadcast %453 : vector<1x1xf32> to vector<1x3xf32>
      %460 = arith.mulf %459, %17 : vector<1x3xf32>
      %461 = arith.addf %458, %460 : vector<1x3xf32>
      %462 = vector.broadcast %456 : vector<1x1xf32> to vector<1x3xf32>
      %463 = arith.mulf %462, %21 : vector<1x3xf32>
      %464 = arith.addf %461, %463 : vector<1x3xf32>
      %465 = vector.broadcast %arg4 : i32 to vector<8x1xi32>
      %466 = arith.cmpi eq, %6, %465 : vector<8x1xi32>
      %467 = arith.extui %466 : vector<8x1xi1> to vector<8x1xi32>
      %468 = arith.sitofp %467 : vector<8x1xi32> to vector<8x1xf32>
      %469 = vector.broadcast %468 : vector<8x1xf32> to vector<8x3xf32>
      %470 = vector.broadcast %464 : vector<1x3xf32> to vector<8x3xf32>
      %471 = arith.mulf %469, %470 : vector<8x3xf32>
      %472 = arith.addf %arg6, %471 : vector<8x3xf32>
      %473 = vector.broadcast %450 : vector<1x1xf32> to vector<1x64xf32>
      %474 = arith.subf %2, %473 : vector<1x64xf32>
      %475 = arith.mulf %474, %474 : vector<1x64xf32>
      %476 = vector.broadcast %453 : vector<1x1xf32> to vector<1x64xf32>
      %477 = arith.subf %3, %476 : vector<1x64xf32>
      %478 = arith.mulf %477, %477 : vector<1x64xf32>
      %479 = arith.addf %475, %478 : vector<1x64xf32>
      %480 = vector.broadcast %456 : vector<1x1xf32> to vector<1x64xf32>
      %481 = arith.subf %4, %480 : vector<1x64xf32>
      %482 = arith.mulf %481, %481 : vector<1x64xf32>
      %483 = arith.addf %479, %482 : vector<1x64xf32>
      %484 = arith.minimumf %arg5, %483 : vector<1x64xf32>
      %cst_91 = arith.constant dense<0xFF800000> : vector<1xf32>
      %485 = vector.multi_reduction <maximumf>, %484, %cst_91 [1] : vector<1x64xf32> to vector<1xf32>
      %486 = vector.shape_cast %485 : vector<1xf32> to vector<1x1xf32>
      %487 = vector.broadcast %486 : vector<1x1xf32> to vector<1x64xf32>
      %488 = arith.cmpf oeq, %484, %487 : vector<1x64xf32>
      %c64_i32_92 = arith.constant 64 : i32
      %489 = vector.broadcast %c64_i32_92 : i32 to vector<1x64xi32>
      %490 = arith.select %488, %5, %489 : vector<1x64xi1>, vector<1x64xi32>
      %cst_93 = arith.constant dense<2147483647> : vector<1xi32>
      %491 = vector.multi_reduction <minsi>, %490, %cst_93 [1] : vector<1x64xi32> to vector<1xi32>
      %492 = vector.shape_cast %491 : vector<1xi32> to vector<1x1xi32>
      scf.yield %484, %472, %492 : vector<1x64xf32>, vector<8x3xf32>, vector<1x1xi32>
    }
    %c8_i32_6 = arith.constant 8 : i32
    %27 = vector.extract_strided_slice %26#1 {offsets = [0, 0], sizes = [8, 1], strides = [1, 1]} : vector<8x3xf32> to vector<8x1xf32>
    %28 = vector.extract_strided_slice %26#1 {offsets = [0, 1], sizes = [8, 1], strides = [1, 1]} : vector<8x3xf32> to vector<8x1xf32>
    %29 = vector.extract_strided_slice %26#1 {offsets = [0, 2], sizes = [8, 1], strides = [1, 1]} : vector<8x3xf32> to vector<8x1xf32>
    %30 = arith.mulf %2, %2 : vector<1x64xf32>
    %31 = arith.mulf %3, %3 : vector<1x64xf32>
    %32 = arith.addf %30, %31 : vector<1x64xf32>
    %33 = arith.mulf %4, %4 : vector<1x64xf32>
    %34 = arith.addf %32, %33 : vector<1x64xf32>
    %35 = arith.mulf %27, %27 : vector<8x1xf32>
    %36 = arith.mulf %28, %28 : vector<8x1xf32>
    %37 = arith.addf %35, %36 : vector<8x1xf32>
    %38 = arith.mulf %29, %29 : vector<8x1xf32>
    %39 = arith.addf %37, %38 : vector<8x1xf32>
    %40 = vector.broadcast %27 : vector<8x1xf32> to vector<8x64xf32>
    %41 = vector.broadcast %2 : vector<1x64xf32> to vector<8x64xf32>
    %42 = arith.mulf %40, %41 : vector<8x64xf32>
    %43 = vector.broadcast %28 : vector<8x1xf32> to vector<8x64xf32>
    %44 = vector.broadcast %3 : vector<1x64xf32> to vector<8x64xf32>
    %45 = arith.mulf %43, %44 : vector<8x64xf32>
    %46 = arith.addf %42, %45 : vector<8x64xf32>
    %47 = vector.broadcast %29 : vector<8x1xf32> to vector<8x64xf32>
    %48 = vector.broadcast %4 : vector<1x64xf32> to vector<8x64xf32>
    %49 = arith.mulf %47, %48 : vector<8x64xf32>
    %50 = arith.addf %46, %49 : vector<8x64xf32>
    %51 = vector.broadcast %39 : vector<8x1xf32> to vector<8x64xf32>
    %52 = vector.broadcast %34 : vector<1x64xf32> to vector<8x64xf32>
    %53 = arith.addf %51, %52 : vector<8x64xf32>
    %cst_7 = arith.constant 2.000000e+00 : f32
    %54 = vector.broadcast %cst_7 : f32 to vector<8x64xf32>
    %55 = arith.mulf %54, %50 : vector<8x64xf32>
    %56 = arith.subf %53, %55 : vector<8x64xf32>
    %cst_8 = arith.constant 0.000000e+00 : f32
    %57 = vector.broadcast %cst_8 : f32 to vector<8x8xf32>
    %cst_9 = arith.constant 0.000000e+00 : f32
    %58 = vector.broadcast %cst_9 : f32 to vector<8x8xf32>
    %cst_10 = arith.constant 0.000000e+00 : f32
    %59 = vector.broadcast %cst_10 : f32 to vector<8x8xf32>
    %cst_11 = arith.constant dense<0x7F800000> : vector<8xf32>
    %60 = vector.multi_reduction <minimumf>, %56, %cst_11 [1] : vector<8x64xf32> to vector<8xf32>
    %61 = vector.shape_cast %60 : vector<8xf32> to vector<8x1xf32>
    %62 = vector.broadcast %61 : vector<8x1xf32> to vector<8x64xf32>
    %63 = arith.cmpf oeq, %56, %62 : vector<8x64xf32>
    %c64_i32 = arith.constant 64 : i32
    %64 = vector.broadcast %c64_i32 : i32 to vector<8x64xi32>
    %65 = arith.select %63, %7, %64 : vector<8x64xi1>, vector<8x64xi32>
    %cst_12 = arith.constant dense<2147483647> : vector<8xi32>
    %66 = vector.multi_reduction <minsi>, %65, %cst_12 [1] : vector<8x64xi32> to vector<8xi32>
    %67 = vector.shape_cast %66 : vector<8xi32> to vector<8x1xi32>
    %68 = vector.broadcast %67 : vector<8x1xi32> to vector<8x64xi32>
    %69 = arith.cmpi eq, %7, %68 : vector<8x64xi32>
    %70 = arith.extui %69 : vector<8x64xi1> to vector<8x64xi32>
    %71 = arith.sitofp %70 : vector<8x64xi32> to vector<8x64xf32>
    %72 = vector.broadcast %2 : vector<1x64xf32> to vector<8x64xf32>
    %73 = arith.mulf %71, %72 : vector<8x64xf32>
    %cst_13 = arith.constant dense<0.000000e+00> : vector<8xf32>
    %74 = vector.multi_reduction <add>, %73, %cst_13 [1] : vector<8x64xf32> to vector<8xf32>
    %75 = vector.shape_cast %74 : vector<8xf32> to vector<8x1xf32>
    %76 = vector.broadcast %3 : vector<1x64xf32> to vector<8x64xf32>
    %77 = arith.mulf %71, %76 : vector<8x64xf32>
    %cst_14 = arith.constant dense<0.000000e+00> : vector<8xf32>
    %78 = vector.multi_reduction <add>, %77, %cst_14 [1] : vector<8x64xf32> to vector<8xf32>
    %79 = vector.shape_cast %78 : vector<8xf32> to vector<8x1xf32>
    %80 = vector.broadcast %4 : vector<1x64xf32> to vector<8x64xf32>
    %81 = arith.mulf %71, %80 : vector<8x64xf32>
    %cst_15 = arith.constant dense<0.000000e+00> : vector<8xf32>
    %82 = vector.multi_reduction <add>, %81, %cst_15 [1] : vector<8x64xf32> to vector<8xf32>
    %83 = vector.shape_cast %82 : vector<8xf32> to vector<8x1xf32>
    %c0_i32_16 = arith.constant 0 : i32
    %84 = vector.broadcast %c0_i32_16 : i32 to vector<1x8xi32>
    %85 = arith.cmpi eq, %8, %84 : vector<1x8xi32>
    %86 = arith.extui %85 : vector<1x8xi1> to vector<1x8xi32>
    %87 = arith.sitofp %86 : vector<1x8xi32> to vector<1x8xf32>
    %88 = arith.subf %75, %27 : vector<8x1xf32>
    %89 = vector.broadcast %88 : vector<8x1xf32> to vector<8x8xf32>
    %90 = vector.broadcast %87 : vector<1x8xf32> to vector<8x8xf32>
    %91 = arith.mulf %89, %90 : vector<8x8xf32>
    %92 = arith.addf %57, %91 : vector<8x8xf32>
    %93 = arith.subf %79, %28 : vector<8x1xf32>
    %94 = vector.broadcast %93 : vector<8x1xf32> to vector<8x8xf32>
    %95 = vector.broadcast %87 : vector<1x8xf32> to vector<8x8xf32>
    %96 = arith.mulf %94, %95 : vector<8x8xf32>
    %97 = arith.addf %58, %96 : vector<8x8xf32>
    %98 = arith.subf %83, %29 : vector<8x1xf32>
    %99 = vector.broadcast %98 : vector<8x1xf32> to vector<8x8xf32>
    %100 = vector.broadcast %87 : vector<1x8xf32> to vector<8x8xf32>
    %101 = arith.mulf %99, %100 : vector<8x8xf32>
    %102 = arith.addf %59, %101 : vector<8x8xf32>
    %cst_17 = arith.constant 0.000000e+00 : f32
    %103 = vector.broadcast %cst_17 : f32 to vector<8x64xf32>
    %104 = arith.cmpf ogt, %71, %103 : vector<8x64xf32>
    %cst_18 = arith.constant 1.000000e+30 : f32
    %105 = vector.broadcast %cst_18 : f32 to vector<8x64xf32>
    %106 = arith.select %104, %105, %56 : vector<8x64xi1>, vector<8x64xf32>
    %cst_19 = arith.constant dense<0x7F800000> : vector<8xf32>
    %107 = vector.multi_reduction <minimumf>, %106, %cst_19 [1] : vector<8x64xf32> to vector<8xf32>
    %108 = vector.shape_cast %107 : vector<8xf32> to vector<8x1xf32>
    %109 = vector.broadcast %108 : vector<8x1xf32> to vector<8x64xf32>
    %110 = arith.cmpf oeq, %106, %109 : vector<8x64xf32>
    %c64_i32_20 = arith.constant 64 : i32
    %111 = vector.broadcast %c64_i32_20 : i32 to vector<8x64xi32>
    %112 = arith.select %110, %7, %111 : vector<8x64xi1>, vector<8x64xi32>
    %cst_21 = arith.constant dense<2147483647> : vector<8xi32>
    %113 = vector.multi_reduction <minsi>, %112, %cst_21 [1] : vector<8x64xi32> to vector<8xi32>
    %114 = vector.shape_cast %113 : vector<8xi32> to vector<8x1xi32>
    %115 = vector.broadcast %114 : vector<8x1xi32> to vector<8x64xi32>
    %116 = arith.cmpi eq, %7, %115 : vector<8x64xi32>
    %117 = arith.extui %116 : vector<8x64xi1> to vector<8x64xi32>
    %118 = arith.sitofp %117 : vector<8x64xi32> to vector<8x64xf32>
    %119 = vector.broadcast %2 : vector<1x64xf32> to vector<8x64xf32>
    %120 = arith.mulf %118, %119 : vector<8x64xf32>
    %cst_22 = arith.constant dense<0.000000e+00> : vector<8xf32>
    %121 = vector.multi_reduction <add>, %120, %cst_22 [1] : vector<8x64xf32> to vector<8xf32>
    %122 = vector.shape_cast %121 : vector<8xf32> to vector<8x1xf32>
    %123 = vector.broadcast %3 : vector<1x64xf32> to vector<8x64xf32>
    %124 = arith.mulf %118, %123 : vector<8x64xf32>
    %cst_23 = arith.constant dense<0.000000e+00> : vector<8xf32>
    %125 = vector.multi_reduction <add>, %124, %cst_23 [1] : vector<8x64xf32> to vector<8xf32>
    %126 = vector.shape_cast %125 : vector<8xf32> to vector<8x1xf32>
    %127 = vector.broadcast %4 : vector<1x64xf32> to vector<8x64xf32>
    %128 = arith.mulf %118, %127 : vector<8x64xf32>
    %cst_24 = arith.constant dense<0.000000e+00> : vector<8xf32>
    %129 = vector.multi_reduction <add>, %128, %cst_24 [1] : vector<8x64xf32> to vector<8xf32>
    %130 = vector.shape_cast %129 : vector<8xf32> to vector<8x1xf32>
    %c1_i32_25 = arith.constant 1 : i32
    %131 = vector.broadcast %c1_i32_25 : i32 to vector<1x8xi32>
    %132 = arith.cmpi eq, %8, %131 : vector<1x8xi32>
    %133 = arith.extui %132 : vector<1x8xi1> to vector<1x8xi32>
    %134 = arith.sitofp %133 : vector<1x8xi32> to vector<1x8xf32>
    %135 = arith.subf %122, %27 : vector<8x1xf32>
    %136 = vector.broadcast %135 : vector<8x1xf32> to vector<8x8xf32>
    %137 = vector.broadcast %134 : vector<1x8xf32> to vector<8x8xf32>
    %138 = arith.mulf %136, %137 : vector<8x8xf32>
    %139 = arith.addf %92, %138 : vector<8x8xf32>
    %140 = arith.subf %126, %28 : vector<8x1xf32>
    %141 = vector.broadcast %140 : vector<8x1xf32> to vector<8x8xf32>
    %142 = vector.broadcast %134 : vector<1x8xf32> to vector<8x8xf32>
    %143 = arith.mulf %141, %142 : vector<8x8xf32>
    %144 = arith.addf %97, %143 : vector<8x8xf32>
    %145 = arith.subf %130, %29 : vector<8x1xf32>
    %146 = vector.broadcast %145 : vector<8x1xf32> to vector<8x8xf32>
    %147 = vector.broadcast %134 : vector<1x8xf32> to vector<8x8xf32>
    %148 = arith.mulf %146, %147 : vector<8x8xf32>
    %149 = arith.addf %102, %148 : vector<8x8xf32>
    %cst_26 = arith.constant 0.000000e+00 : f32
    %150 = vector.broadcast %cst_26 : f32 to vector<8x64xf32>
    %151 = arith.cmpf ogt, %118, %150 : vector<8x64xf32>
    %cst_27 = arith.constant 1.000000e+30 : f32
    %152 = vector.broadcast %cst_27 : f32 to vector<8x64xf32>
    %153 = arith.select %151, %152, %106 : vector<8x64xi1>, vector<8x64xf32>
    %cst_28 = arith.constant dense<0x7F800000> : vector<8xf32>
    %154 = vector.multi_reduction <minimumf>, %153, %cst_28 [1] : vector<8x64xf32> to vector<8xf32>
    %155 = vector.shape_cast %154 : vector<8xf32> to vector<8x1xf32>
    %156 = vector.broadcast %155 : vector<8x1xf32> to vector<8x64xf32>
    %157 = arith.cmpf oeq, %153, %156 : vector<8x64xf32>
    %c64_i32_29 = arith.constant 64 : i32
    %158 = vector.broadcast %c64_i32_29 : i32 to vector<8x64xi32>
    %159 = arith.select %157, %7, %158 : vector<8x64xi1>, vector<8x64xi32>
    %cst_30 = arith.constant dense<2147483647> : vector<8xi32>
    %160 = vector.multi_reduction <minsi>, %159, %cst_30 [1] : vector<8x64xi32> to vector<8xi32>
    %161 = vector.shape_cast %160 : vector<8xi32> to vector<8x1xi32>
    %162 = vector.broadcast %161 : vector<8x1xi32> to vector<8x64xi32>
    %163 = arith.cmpi eq, %7, %162 : vector<8x64xi32>
    %164 = arith.extui %163 : vector<8x64xi1> to vector<8x64xi32>
    %165 = arith.sitofp %164 : vector<8x64xi32> to vector<8x64xf32>
    %166 = vector.broadcast %2 : vector<1x64xf32> to vector<8x64xf32>
    %167 = arith.mulf %165, %166 : vector<8x64xf32>
    %cst_31 = arith.constant dense<0.000000e+00> : vector<8xf32>
    %168 = vector.multi_reduction <add>, %167, %cst_31 [1] : vector<8x64xf32> to vector<8xf32>
    %169 = vector.shape_cast %168 : vector<8xf32> to vector<8x1xf32>
    %170 = vector.broadcast %3 : vector<1x64xf32> to vector<8x64xf32>
    %171 = arith.mulf %165, %170 : vector<8x64xf32>
    %cst_32 = arith.constant dense<0.000000e+00> : vector<8xf32>
    %172 = vector.multi_reduction <add>, %171, %cst_32 [1] : vector<8x64xf32> to vector<8xf32>
    %173 = vector.shape_cast %172 : vector<8xf32> to vector<8x1xf32>
    %174 = vector.broadcast %4 : vector<1x64xf32> to vector<8x64xf32>
    %175 = arith.mulf %165, %174 : vector<8x64xf32>
    %cst_33 = arith.constant dense<0.000000e+00> : vector<8xf32>
    %176 = vector.multi_reduction <add>, %175, %cst_33 [1] : vector<8x64xf32> to vector<8xf32>
    %177 = vector.shape_cast %176 : vector<8xf32> to vector<8x1xf32>
    %c2_i32_34 = arith.constant 2 : i32
    %178 = vector.broadcast %c2_i32_34 : i32 to vector<1x8xi32>
    %179 = arith.cmpi eq, %8, %178 : vector<1x8xi32>
    %180 = arith.extui %179 : vector<1x8xi1> to vector<1x8xi32>
    %181 = arith.sitofp %180 : vector<1x8xi32> to vector<1x8xf32>
    %182 = arith.subf %169, %27 : vector<8x1xf32>
    %183 = vector.broadcast %182 : vector<8x1xf32> to vector<8x8xf32>
    %184 = vector.broadcast %181 : vector<1x8xf32> to vector<8x8xf32>
    %185 = arith.mulf %183, %184 : vector<8x8xf32>
    %186 = arith.addf %139, %185 : vector<8x8xf32>
    %187 = arith.subf %173, %28 : vector<8x1xf32>
    %188 = vector.broadcast %187 : vector<8x1xf32> to vector<8x8xf32>
    %189 = vector.broadcast %181 : vector<1x8xf32> to vector<8x8xf32>
    %190 = arith.mulf %188, %189 : vector<8x8xf32>
    %191 = arith.addf %144, %190 : vector<8x8xf32>
    %192 = arith.subf %177, %29 : vector<8x1xf32>
    %193 = vector.broadcast %192 : vector<8x1xf32> to vector<8x8xf32>
    %194 = vector.broadcast %181 : vector<1x8xf32> to vector<8x8xf32>
    %195 = arith.mulf %193, %194 : vector<8x8xf32>
    %196 = arith.addf %149, %195 : vector<8x8xf32>
    %cst_35 = arith.constant 0.000000e+00 : f32
    %197 = vector.broadcast %cst_35 : f32 to vector<8x64xf32>
    %198 = arith.cmpf ogt, %165, %197 : vector<8x64xf32>
    %cst_36 = arith.constant 1.000000e+30 : f32
    %199 = vector.broadcast %cst_36 : f32 to vector<8x64xf32>
    %200 = arith.select %198, %199, %153 : vector<8x64xi1>, vector<8x64xf32>
    %cst_37 = arith.constant dense<0x7F800000> : vector<8xf32>
    %201 = vector.multi_reduction <minimumf>, %200, %cst_37 [1] : vector<8x64xf32> to vector<8xf32>
    %202 = vector.shape_cast %201 : vector<8xf32> to vector<8x1xf32>
    %203 = vector.broadcast %202 : vector<8x1xf32> to vector<8x64xf32>
    %204 = arith.cmpf oeq, %200, %203 : vector<8x64xf32>
    %c64_i32_38 = arith.constant 64 : i32
    %205 = vector.broadcast %c64_i32_38 : i32 to vector<8x64xi32>
    %206 = arith.select %204, %7, %205 : vector<8x64xi1>, vector<8x64xi32>
    %cst_39 = arith.constant dense<2147483647> : vector<8xi32>
    %207 = vector.multi_reduction <minsi>, %206, %cst_39 [1] : vector<8x64xi32> to vector<8xi32>
    %208 = vector.shape_cast %207 : vector<8xi32> to vector<8x1xi32>
    %209 = vector.broadcast %208 : vector<8x1xi32> to vector<8x64xi32>
    %210 = arith.cmpi eq, %7, %209 : vector<8x64xi32>
    %211 = arith.extui %210 : vector<8x64xi1> to vector<8x64xi32>
    %212 = arith.sitofp %211 : vector<8x64xi32> to vector<8x64xf32>
    %213 = vector.broadcast %2 : vector<1x64xf32> to vector<8x64xf32>
    %214 = arith.mulf %212, %213 : vector<8x64xf32>
    %cst_40 = arith.constant dense<0.000000e+00> : vector<8xf32>
    %215 = vector.multi_reduction <add>, %214, %cst_40 [1] : vector<8x64xf32> to vector<8xf32>
    %216 = vector.shape_cast %215 : vector<8xf32> to vector<8x1xf32>
    %217 = vector.broadcast %3 : vector<1x64xf32> to vector<8x64xf32>
    %218 = arith.mulf %212, %217 : vector<8x64xf32>
    %cst_41 = arith.constant dense<0.000000e+00> : vector<8xf32>
    %219 = vector.multi_reduction <add>, %218, %cst_41 [1] : vector<8x64xf32> to vector<8xf32>
    %220 = vector.shape_cast %219 : vector<8xf32> to vector<8x1xf32>
    %221 = vector.broadcast %4 : vector<1x64xf32> to vector<8x64xf32>
    %222 = arith.mulf %212, %221 : vector<8x64xf32>
    %cst_42 = arith.constant dense<0.000000e+00> : vector<8xf32>
    %223 = vector.multi_reduction <add>, %222, %cst_42 [1] : vector<8x64xf32> to vector<8xf32>
    %224 = vector.shape_cast %223 : vector<8xf32> to vector<8x1xf32>
    %c3_i32 = arith.constant 3 : i32
    %225 = vector.broadcast %c3_i32 : i32 to vector<1x8xi32>
    %226 = arith.cmpi eq, %8, %225 : vector<1x8xi32>
    %227 = arith.extui %226 : vector<1x8xi1> to vector<1x8xi32>
    %228 = arith.sitofp %227 : vector<1x8xi32> to vector<1x8xf32>
    %229 = arith.subf %216, %27 : vector<8x1xf32>
    %230 = vector.broadcast %229 : vector<8x1xf32> to vector<8x8xf32>
    %231 = vector.broadcast %228 : vector<1x8xf32> to vector<8x8xf32>
    %232 = arith.mulf %230, %231 : vector<8x8xf32>
    %233 = arith.addf %186, %232 : vector<8x8xf32>
    %234 = arith.subf %220, %28 : vector<8x1xf32>
    %235 = vector.broadcast %234 : vector<8x1xf32> to vector<8x8xf32>
    %236 = vector.broadcast %228 : vector<1x8xf32> to vector<8x8xf32>
    %237 = arith.mulf %235, %236 : vector<8x8xf32>
    %238 = arith.addf %191, %237 : vector<8x8xf32>
    %239 = arith.subf %224, %29 : vector<8x1xf32>
    %240 = vector.broadcast %239 : vector<8x1xf32> to vector<8x8xf32>
    %241 = vector.broadcast %228 : vector<1x8xf32> to vector<8x8xf32>
    %242 = arith.mulf %240, %241 : vector<8x8xf32>
    %243 = arith.addf %196, %242 : vector<8x8xf32>
    %cst_43 = arith.constant 0.000000e+00 : f32
    %244 = vector.broadcast %cst_43 : f32 to vector<8x64xf32>
    %245 = arith.cmpf ogt, %212, %244 : vector<8x64xf32>
    %cst_44 = arith.constant 1.000000e+30 : f32
    %246 = vector.broadcast %cst_44 : f32 to vector<8x64xf32>
    %247 = arith.select %245, %246, %200 : vector<8x64xi1>, vector<8x64xf32>
    %cst_45 = arith.constant dense<0x7F800000> : vector<8xf32>
    %248 = vector.multi_reduction <minimumf>, %247, %cst_45 [1] : vector<8x64xf32> to vector<8xf32>
    %249 = vector.shape_cast %248 : vector<8xf32> to vector<8x1xf32>
    %250 = vector.broadcast %249 : vector<8x1xf32> to vector<8x64xf32>
    %251 = arith.cmpf oeq, %247, %250 : vector<8x64xf32>
    %c64_i32_46 = arith.constant 64 : i32
    %252 = vector.broadcast %c64_i32_46 : i32 to vector<8x64xi32>
    %253 = arith.select %251, %7, %252 : vector<8x64xi1>, vector<8x64xi32>
    %cst_47 = arith.constant dense<2147483647> : vector<8xi32>
    %254 = vector.multi_reduction <minsi>, %253, %cst_47 [1] : vector<8x64xi32> to vector<8xi32>
    %255 = vector.shape_cast %254 : vector<8xi32> to vector<8x1xi32>
    %256 = vector.broadcast %255 : vector<8x1xi32> to vector<8x64xi32>
    %257 = arith.cmpi eq, %7, %256 : vector<8x64xi32>
    %258 = arith.extui %257 : vector<8x64xi1> to vector<8x64xi32>
    %259 = arith.sitofp %258 : vector<8x64xi32> to vector<8x64xf32>
    %260 = vector.broadcast %2 : vector<1x64xf32> to vector<8x64xf32>
    %261 = arith.mulf %259, %260 : vector<8x64xf32>
    %cst_48 = arith.constant dense<0.000000e+00> : vector<8xf32>
    %262 = vector.multi_reduction <add>, %261, %cst_48 [1] : vector<8x64xf32> to vector<8xf32>
    %263 = vector.shape_cast %262 : vector<8xf32> to vector<8x1xf32>
    %264 = vector.broadcast %3 : vector<1x64xf32> to vector<8x64xf32>
    %265 = arith.mulf %259, %264 : vector<8x64xf32>
    %cst_49 = arith.constant dense<0.000000e+00> : vector<8xf32>
    %266 = vector.multi_reduction <add>, %265, %cst_49 [1] : vector<8x64xf32> to vector<8xf32>
    %267 = vector.shape_cast %266 : vector<8xf32> to vector<8x1xf32>
    %268 = vector.broadcast %4 : vector<1x64xf32> to vector<8x64xf32>
    %269 = arith.mulf %259, %268 : vector<8x64xf32>
    %cst_50 = arith.constant dense<0.000000e+00> : vector<8xf32>
    %270 = vector.multi_reduction <add>, %269, %cst_50 [1] : vector<8x64xf32> to vector<8xf32>
    %271 = vector.shape_cast %270 : vector<8xf32> to vector<8x1xf32>
    %c4_i32 = arith.constant 4 : i32
    %272 = vector.broadcast %c4_i32 : i32 to vector<1x8xi32>
    %273 = arith.cmpi eq, %8, %272 : vector<1x8xi32>
    %274 = arith.extui %273 : vector<1x8xi1> to vector<1x8xi32>
    %275 = arith.sitofp %274 : vector<1x8xi32> to vector<1x8xf32>
    %276 = arith.subf %263, %27 : vector<8x1xf32>
    %277 = vector.broadcast %276 : vector<8x1xf32> to vector<8x8xf32>
    %278 = vector.broadcast %275 : vector<1x8xf32> to vector<8x8xf32>
    %279 = arith.mulf %277, %278 : vector<8x8xf32>
    %280 = arith.addf %233, %279 : vector<8x8xf32>
    %281 = arith.subf %267, %28 : vector<8x1xf32>
    %282 = vector.broadcast %281 : vector<8x1xf32> to vector<8x8xf32>
    %283 = vector.broadcast %275 : vector<1x8xf32> to vector<8x8xf32>
    %284 = arith.mulf %282, %283 : vector<8x8xf32>
    %285 = arith.addf %238, %284 : vector<8x8xf32>
    %286 = arith.subf %271, %29 : vector<8x1xf32>
    %287 = vector.broadcast %286 : vector<8x1xf32> to vector<8x8xf32>
    %288 = vector.broadcast %275 : vector<1x8xf32> to vector<8x8xf32>
    %289 = arith.mulf %287, %288 : vector<8x8xf32>
    %290 = arith.addf %243, %289 : vector<8x8xf32>
    %cst_51 = arith.constant 0.000000e+00 : f32
    %291 = vector.broadcast %cst_51 : f32 to vector<8x64xf32>
    %292 = arith.cmpf ogt, %259, %291 : vector<8x64xf32>
    %cst_52 = arith.constant 1.000000e+30 : f32
    %293 = vector.broadcast %cst_52 : f32 to vector<8x64xf32>
    %294 = arith.select %292, %293, %247 : vector<8x64xi1>, vector<8x64xf32>
    %cst_53 = arith.constant dense<0x7F800000> : vector<8xf32>
    %295 = vector.multi_reduction <minimumf>, %294, %cst_53 [1] : vector<8x64xf32> to vector<8xf32>
    %296 = vector.shape_cast %295 : vector<8xf32> to vector<8x1xf32>
    %297 = vector.broadcast %296 : vector<8x1xf32> to vector<8x64xf32>
    %298 = arith.cmpf oeq, %294, %297 : vector<8x64xf32>
    %c64_i32_54 = arith.constant 64 : i32
    %299 = vector.broadcast %c64_i32_54 : i32 to vector<8x64xi32>
    %300 = arith.select %298, %7, %299 : vector<8x64xi1>, vector<8x64xi32>
    %cst_55 = arith.constant dense<2147483647> : vector<8xi32>
    %301 = vector.multi_reduction <minsi>, %300, %cst_55 [1] : vector<8x64xi32> to vector<8xi32>
    %302 = vector.shape_cast %301 : vector<8xi32> to vector<8x1xi32>
    %303 = vector.broadcast %302 : vector<8x1xi32> to vector<8x64xi32>
    %304 = arith.cmpi eq, %7, %303 : vector<8x64xi32>
    %305 = arith.extui %304 : vector<8x64xi1> to vector<8x64xi32>
    %306 = arith.sitofp %305 : vector<8x64xi32> to vector<8x64xf32>
    %307 = vector.broadcast %2 : vector<1x64xf32> to vector<8x64xf32>
    %308 = arith.mulf %306, %307 : vector<8x64xf32>
    %cst_56 = arith.constant dense<0.000000e+00> : vector<8xf32>
    %309 = vector.multi_reduction <add>, %308, %cst_56 [1] : vector<8x64xf32> to vector<8xf32>
    %310 = vector.shape_cast %309 : vector<8xf32> to vector<8x1xf32>
    %311 = vector.broadcast %3 : vector<1x64xf32> to vector<8x64xf32>
    %312 = arith.mulf %306, %311 : vector<8x64xf32>
    %cst_57 = arith.constant dense<0.000000e+00> : vector<8xf32>
    %313 = vector.multi_reduction <add>, %312, %cst_57 [1] : vector<8x64xf32> to vector<8xf32>
    %314 = vector.shape_cast %313 : vector<8xf32> to vector<8x1xf32>
    %315 = vector.broadcast %4 : vector<1x64xf32> to vector<8x64xf32>
    %316 = arith.mulf %306, %315 : vector<8x64xf32>
    %cst_58 = arith.constant dense<0.000000e+00> : vector<8xf32>
    %317 = vector.multi_reduction <add>, %316, %cst_58 [1] : vector<8x64xf32> to vector<8xf32>
    %318 = vector.shape_cast %317 : vector<8xf32> to vector<8x1xf32>
    %c5_i32 = arith.constant 5 : i32
    %319 = vector.broadcast %c5_i32 : i32 to vector<1x8xi32>
    %320 = arith.cmpi eq, %8, %319 : vector<1x8xi32>
    %321 = arith.extui %320 : vector<1x8xi1> to vector<1x8xi32>
    %322 = arith.sitofp %321 : vector<1x8xi32> to vector<1x8xf32>
    %323 = arith.subf %310, %27 : vector<8x1xf32>
    %324 = vector.broadcast %323 : vector<8x1xf32> to vector<8x8xf32>
    %325 = vector.broadcast %322 : vector<1x8xf32> to vector<8x8xf32>
    %326 = arith.mulf %324, %325 : vector<8x8xf32>
    %327 = arith.addf %280, %326 : vector<8x8xf32>
    %328 = arith.subf %314, %28 : vector<8x1xf32>
    %329 = vector.broadcast %328 : vector<8x1xf32> to vector<8x8xf32>
    %330 = vector.broadcast %322 : vector<1x8xf32> to vector<8x8xf32>
    %331 = arith.mulf %329, %330 : vector<8x8xf32>
    %332 = arith.addf %285, %331 : vector<8x8xf32>
    %333 = arith.subf %318, %29 : vector<8x1xf32>
    %334 = vector.broadcast %333 : vector<8x1xf32> to vector<8x8xf32>
    %335 = vector.broadcast %322 : vector<1x8xf32> to vector<8x8xf32>
    %336 = arith.mulf %334, %335 : vector<8x8xf32>
    %337 = arith.addf %290, %336 : vector<8x8xf32>
    %cst_59 = arith.constant 0.000000e+00 : f32
    %338 = vector.broadcast %cst_59 : f32 to vector<8x64xf32>
    %339 = arith.cmpf ogt, %306, %338 : vector<8x64xf32>
    %cst_60 = arith.constant 1.000000e+30 : f32
    %340 = vector.broadcast %cst_60 : f32 to vector<8x64xf32>
    %341 = arith.select %339, %340, %294 : vector<8x64xi1>, vector<8x64xf32>
    %cst_61 = arith.constant dense<0x7F800000> : vector<8xf32>
    %342 = vector.multi_reduction <minimumf>, %341, %cst_61 [1] : vector<8x64xf32> to vector<8xf32>
    %343 = vector.shape_cast %342 : vector<8xf32> to vector<8x1xf32>
    %344 = vector.broadcast %343 : vector<8x1xf32> to vector<8x64xf32>
    %345 = arith.cmpf oeq, %341, %344 : vector<8x64xf32>
    %c64_i32_62 = arith.constant 64 : i32
    %346 = vector.broadcast %c64_i32_62 : i32 to vector<8x64xi32>
    %347 = arith.select %345, %7, %346 : vector<8x64xi1>, vector<8x64xi32>
    %cst_63 = arith.constant dense<2147483647> : vector<8xi32>
    %348 = vector.multi_reduction <minsi>, %347, %cst_63 [1] : vector<8x64xi32> to vector<8xi32>
    %349 = vector.shape_cast %348 : vector<8xi32> to vector<8x1xi32>
    %350 = vector.broadcast %349 : vector<8x1xi32> to vector<8x64xi32>
    %351 = arith.cmpi eq, %7, %350 : vector<8x64xi32>
    %352 = arith.extui %351 : vector<8x64xi1> to vector<8x64xi32>
    %353 = arith.sitofp %352 : vector<8x64xi32> to vector<8x64xf32>
    %354 = vector.broadcast %2 : vector<1x64xf32> to vector<8x64xf32>
    %355 = arith.mulf %353, %354 : vector<8x64xf32>
    %cst_64 = arith.constant dense<0.000000e+00> : vector<8xf32>
    %356 = vector.multi_reduction <add>, %355, %cst_64 [1] : vector<8x64xf32> to vector<8xf32>
    %357 = vector.shape_cast %356 : vector<8xf32> to vector<8x1xf32>
    %358 = vector.broadcast %3 : vector<1x64xf32> to vector<8x64xf32>
    %359 = arith.mulf %353, %358 : vector<8x64xf32>
    %cst_65 = arith.constant dense<0.000000e+00> : vector<8xf32>
    %360 = vector.multi_reduction <add>, %359, %cst_65 [1] : vector<8x64xf32> to vector<8xf32>
    %361 = vector.shape_cast %360 : vector<8xf32> to vector<8x1xf32>
    %362 = vector.broadcast %4 : vector<1x64xf32> to vector<8x64xf32>
    %363 = arith.mulf %353, %362 : vector<8x64xf32>
    %cst_66 = arith.constant dense<0.000000e+00> : vector<8xf32>
    %364 = vector.multi_reduction <add>, %363, %cst_66 [1] : vector<8x64xf32> to vector<8xf32>
    %365 = vector.shape_cast %364 : vector<8xf32> to vector<8x1xf32>
    %c6_i32 = arith.constant 6 : i32
    %366 = vector.broadcast %c6_i32 : i32 to vector<1x8xi32>
    %367 = arith.cmpi eq, %8, %366 : vector<1x8xi32>
    %368 = arith.extui %367 : vector<1x8xi1> to vector<1x8xi32>
    %369 = arith.sitofp %368 : vector<1x8xi32> to vector<1x8xf32>
    %370 = arith.subf %357, %27 : vector<8x1xf32>
    %371 = vector.broadcast %370 : vector<8x1xf32> to vector<8x8xf32>
    %372 = vector.broadcast %369 : vector<1x8xf32> to vector<8x8xf32>
    %373 = arith.mulf %371, %372 : vector<8x8xf32>
    %374 = arith.addf %327, %373 : vector<8x8xf32>
    %375 = arith.subf %361, %28 : vector<8x1xf32>
    %376 = vector.broadcast %375 : vector<8x1xf32> to vector<8x8xf32>
    %377 = vector.broadcast %369 : vector<1x8xf32> to vector<8x8xf32>
    %378 = arith.mulf %376, %377 : vector<8x8xf32>
    %379 = arith.addf %332, %378 : vector<8x8xf32>
    %380 = arith.subf %365, %29 : vector<8x1xf32>
    %381 = vector.broadcast %380 : vector<8x1xf32> to vector<8x8xf32>
    %382 = vector.broadcast %369 : vector<1x8xf32> to vector<8x8xf32>
    %383 = arith.mulf %381, %382 : vector<8x8xf32>
    %384 = arith.addf %337, %383 : vector<8x8xf32>
    %cst_67 = arith.constant 0.000000e+00 : f32
    %385 = vector.broadcast %cst_67 : f32 to vector<8x64xf32>
    %386 = arith.cmpf ogt, %353, %385 : vector<8x64xf32>
    %cst_68 = arith.constant 1.000000e+30 : f32
    %387 = vector.broadcast %cst_68 : f32 to vector<8x64xf32>
    %388 = arith.select %386, %387, %341 : vector<8x64xi1>, vector<8x64xf32>
    %cst_69 = arith.constant dense<0x7F800000> : vector<8xf32>
    %389 = vector.multi_reduction <minimumf>, %388, %cst_69 [1] : vector<8x64xf32> to vector<8xf32>
    %390 = vector.shape_cast %389 : vector<8xf32> to vector<8x1xf32>
    %391 = vector.broadcast %390 : vector<8x1xf32> to vector<8x64xf32>
    %392 = arith.cmpf oeq, %388, %391 : vector<8x64xf32>
    %c64_i32_70 = arith.constant 64 : i32
    %393 = vector.broadcast %c64_i32_70 : i32 to vector<8x64xi32>
    %394 = arith.select %392, %7, %393 : vector<8x64xi1>, vector<8x64xi32>
    %cst_71 = arith.constant dense<2147483647> : vector<8xi32>
    %395 = vector.multi_reduction <minsi>, %394, %cst_71 [1] : vector<8x64xi32> to vector<8xi32>
    %396 = vector.shape_cast %395 : vector<8xi32> to vector<8x1xi32>
    %397 = vector.broadcast %396 : vector<8x1xi32> to vector<8x64xi32>
    %398 = arith.cmpi eq, %7, %397 : vector<8x64xi32>
    %399 = arith.extui %398 : vector<8x64xi1> to vector<8x64xi32>
    %400 = arith.sitofp %399 : vector<8x64xi32> to vector<8x64xf32>
    %401 = vector.broadcast %2 : vector<1x64xf32> to vector<8x64xf32>
    %402 = arith.mulf %400, %401 : vector<8x64xf32>
    %cst_72 = arith.constant dense<0.000000e+00> : vector<8xf32>
    %403 = vector.multi_reduction <add>, %402, %cst_72 [1] : vector<8x64xf32> to vector<8xf32>
    %404 = vector.shape_cast %403 : vector<8xf32> to vector<8x1xf32>
    %405 = vector.broadcast %3 : vector<1x64xf32> to vector<8x64xf32>
    %406 = arith.mulf %400, %405 : vector<8x64xf32>
    %cst_73 = arith.constant dense<0.000000e+00> : vector<8xf32>
    %407 = vector.multi_reduction <add>, %406, %cst_73 [1] : vector<8x64xf32> to vector<8xf32>
    %408 = vector.shape_cast %407 : vector<8xf32> to vector<8x1xf32>
    %409 = vector.broadcast %4 : vector<1x64xf32> to vector<8x64xf32>
    %410 = arith.mulf %400, %409 : vector<8x64xf32>
    %cst_74 = arith.constant dense<0.000000e+00> : vector<8xf32>
    %411 = vector.multi_reduction <add>, %410, %cst_74 [1] : vector<8x64xf32> to vector<8xf32>
    %412 = vector.shape_cast %411 : vector<8xf32> to vector<8x1xf32>
    %c7_i32 = arith.constant 7 : i32
    %413 = vector.broadcast %c7_i32 : i32 to vector<1x8xi32>
    %414 = arith.cmpi eq, %8, %413 : vector<1x8xi32>
    %415 = arith.extui %414 : vector<1x8xi1> to vector<1x8xi32>
    %416 = arith.sitofp %415 : vector<1x8xi32> to vector<1x8xf32>
    %417 = arith.subf %404, %27 : vector<8x1xf32>
    %418 = vector.broadcast %417 : vector<8x1xf32> to vector<8x8xf32>
    %419 = vector.broadcast %416 : vector<1x8xf32> to vector<8x8xf32>
    %420 = arith.mulf %418, %419 : vector<8x8xf32>
    %421 = arith.addf %374, %420 : vector<8x8xf32>
    %422 = arith.subf %408, %28 : vector<8x1xf32>
    %423 = vector.broadcast %422 : vector<8x1xf32> to vector<8x8xf32>
    %424 = vector.broadcast %416 : vector<1x8xf32> to vector<8x8xf32>
    %425 = arith.mulf %423, %424 : vector<8x8xf32>
    %426 = arith.addf %379, %425 : vector<8x8xf32>
    %427 = arith.subf %412, %29 : vector<8x1xf32>
    %428 = vector.broadcast %427 : vector<8x1xf32> to vector<8x8xf32>
    %429 = vector.broadcast %416 : vector<1x8xf32> to vector<8x8xf32>
    %430 = arith.mulf %428, %429 : vector<8x8xf32>
    %431 = arith.addf %384, %430 : vector<8x8xf32>
    %c0_75 = arith.constant 0 : index
    %c0_76 = arith.constant 0 : index
    %c0_77 = arith.constant 0 : index
    %c0_78 = arith.constant 0 : index
    %432 = vector.load %arg2[%c0_75, %c0_76, %c0_77, %c0_78] : memref<1x3x8x8xf32, #tpu.memory_space<vmem>>, vector<1x1x8x8xf32>
    %433 = vector.shape_cast %432 : vector<1x1x8x8xf32> to vector<8x8xf32>
    %434 = vector.shape_cast %421 : vector<8x8xf32> to vector<1x1x8x8xf32>
    tpu.vector_store %arg2[%c0_75, %c0_76, %c0_77, %c0_78], %434 {strides = array<i32>} : memref<1x3x8x8xf32, #tpu.memory_space<vmem>>, vector<1x1x8x8xf32>,
    %c0_79 = arith.constant 0 : index
    %c1 = arith.constant 1 : index
    %c0_80 = arith.constant 0 : index
    %c0_81 = arith.constant 0 : index
    %435 = vector.load %arg2[%c0_79, %c1, %c0_80, %c0_81] : memref<1x3x8x8xf32, #tpu.memory_space<vmem>>, vector<1x1x8x8xf32>
    %436 = vector.shape_cast %435 : vector<1x1x8x8xf32> to vector<8x8xf32>
    %437 = vector.shape_cast %426 : vector<8x8xf32> to vector<1x1x8x8xf32>
    tpu.vector_store %arg2[%c0_79, %c1, %c0_80, %c0_81], %437 {strides = array<i32>} : memref<1x3x8x8xf32, #tpu.memory_space<vmem>>, vector<1x1x8x8xf32>,
    %c0_82 = arith.constant 0 : index
    %c2 = arith.constant 2 : index
    %c0_83 = arith.constant 0 : index
    %c0_84 = arith.constant 0 : index
    %438 = vector.load %arg2[%c0_82, %c2, %c0_83, %c0_84] : memref<1x3x8x8xf32, #tpu.memory_space<vmem>>, vector<1x1x8x8xf32>
    %439 = vector.shape_cast %438 : vector<1x1x8x8xf32> to vector<8x8xf32>
    %440 = vector.shape_cast %431 : vector<8x8xf32> to vector<1x1x8x8xf32>
    tpu.vector_store %arg2[%c0_82, %c2, %c0_83, %c0_84], %440 {strides = array<i32>} : memref<1x3x8x8xf32, #tpu.memory_space<vmem>>, vector<1x1x8x8xf32>,
    %c0_85 = arith.constant 0 : index
    %c0_86 = arith.constant 0 : index
    %c0_87 = arith.constant 0 : index
    %441 = vector.load %arg3[%c0_85, %c0_86, %c0_87] : memref<1x8x3xf32, #tpu.memory_space<vmem>>, vector<1x8x3xf32>
    %442 = vector.shape_cast %441 : vector<1x8x3xf32> to vector<8x3xf32>
    %443 = vector.shape_cast %26#1 : vector<8x3xf32> to vector<1x8x3xf32>
    tpu.vector_store %arg3[%c0_85, %c0_86, %c0_87], %443 {strides = array<i32>} : memref<1x8x3xf32, #tpu.memory_space<vmem>>, vector<1x8x3xf32>,
    return
  }
  func.func @transform_0(%arg0: i32) -> (i32, i32, i32) {
    %c0_i32 = arith.constant 0 : i32
    %c0_i32_0 = arith.constant 0 : i32
    %c0_i32_1 = arith.constant 0 : i32
    return %arg0, %c0_i32, %c0_i32_0 : i32, i32, i32
  }
  func.func @transform_1(%arg0: i32) -> (i32, i32, i32, i32) {
    %c0_i32 = arith.constant 0 : i32
    %c0_i32_0 = arith.constant 0 : i32
    %c0_i32_1 = arith.constant 0 : i32
    %c0_i32_2 = arith.constant 0 : i32
    return %arg0, %c0_i32, %c0_i32_0, %c0_i32_1 : i32, i32, i32, i32
  }
  func.func @transform_2(%arg0: i32) -> (i32, i32, i32) {
    %c0_i32 = arith.constant 0 : i32
    %c0_i32_0 = arith.constant 0 : i32
    %c0_i32_1 = arith.constant 0 : i32
    return %arg0, %c0_i32, %c0_i32_0 : i32, i32, i32
  }
}

</mosaic_0001>

<bundles_post_ra>
// kernel: tpu_custom_call.1
= control target key start
LH: loop header
LB: loop body
LE: loop exit
PB: predicated region body
PF: predicated region fallthrough
CT: control target
= control target key end

     0   :  { %8 = vsyncpa [#allocation3], 0  ;;  %s1633_s0 = inlined_call_operand.vmem [shape: f32[2,3,64], index: 0, kind: input, shape index: {}]   ;;  %s1634_s1 = inlined_call_operand.hbm [shape: f32[2,3,8,8], index: 1, kind: output, shape index: {0}]   ;;  %s1635_s2 = inlined_call_operand.vmem [shape: f32[2,8,3], index: 2, kind: output, shape index: {1}]  }
   0x1   :  { %10 = vsyncpa [#allocation3 + $0x1], 0  ;;  %s1196_s9 = smov 0   ;;  %s1198_s10 = smov 0  }
   0x2   :  { %s1200_s11 = smov 0   ;;  %s1202_s12 = smov 0  }
   0x3 LB: > { %s1217_s13 = sadd.s32 4294967295, %s1153_s12   ;;  %s943_s14 = sadd.s32 4294967294, %s1153_s12   ;;  %s1153_s12 = sphi %s1202_s12, %s1643_s12   ;;  %s1149_s11 = sphi %s1200_s11, %s1642_s11   ;;  %s1145_s10 = sphi %s1198_s10, %s1641_s10   ;;  %s1141_s9 = sphi %s1196_s9, %s1640_s9  }
   0x4   : > { %s1221_s15 = sadd.s32 1, %s1153_s12   ;;  %s49_s16 = sadd.s32 1, %s1149_s11 }
   0x5   : > { %s46_s17 = ssub.s32 %s1153_s12, %s1221_s15  ;;  %p59_p0 = scmp.ne.s32.totalorder %s1149_s11, %s1145_s10 }
   0x6   : > { %p47_p1 = scmp.eq.s32.totalorder %s46_s17, 0  ;;  %p60_p2 = scmp.eq.s32.totalorder %s1217_s13, 1 }
   0x7   : > { %p65_p3 = scmp.ne.s32.totalorder %s1145_s10, %s1141_s9  ;;  %p66_p4 = scmp.eq.s32.totalorder %s943_s14, 1 }
   0x8   : > { %s1232_s18 = scalar_select %p47_p1, %s1149_s11, %s49_s16  }
   0x9   : > { %p1234_p5 = por %p60_p2, %p59_p0  ;;  %p1238_p6 = por %p66_p4, %p65_p3 }
   0xa   : > { %p946_p7 = scmp.ge.s32.totalorder %s1153_s12, 1  ;;  %p117_p8 = scmp.lt.s32.totalorder %s1153_s12, 3 }
   0xc   : > { %p118_p9 = pnand %p946_p7, %p117_p8 }
   0xd   : > { %s133_s21 = sand.u32 (!%p118_p9), 1, %s1145_s10   ;;  %p142_p10 = scmp.lt.s32.totalorder (!%p118_p9), %s1217_s13, 1 }
   0xe   : > { %121 = sbr.rel (%p118_p9) target bundleno = 4598 (0x11f6), region = 24  ;;  %s1283_s5 = smov (!%p118_p9), 0  }
   0xf   : > { %s972_s22 = smul.u32 (!%p118_p9), 24, %s133_s21 }
  0x11   : > { %s1275_s4 = scalar_lea.vmem (!%p118_p9), [#allocation2], %s972_s22 }
  0x13   : > { %v151_v0 = vlaneseq  ;;  %s143_s23 = scalar_select %p142_p10, %s1217_s13, 1  ;;  %v1171_v3 = vmov 0.0   ;;  %v1277_v8 = vmov 0   ;;  %v1279_v9 = vmov 0.0  }
  0x14   : > { %v1281_v10 = vmov 1e+10  }
  0x15   : > { %v1249_v1 = vand.u32 127, %v151_v0  ;;  %v1251_v2 = vshrl.u32 %v151_v0, 7  ;;  %s947_s24 = sshll.u32 %s143_s23, 2  ;;  %s948_s25 = sshll.u32 %s143_s23, 3 }
  0x16   : > { %s145_s28 = scalar_lea.vmem %s1633_s0, %s947_s24  ;;  %s1262_s3 = scalar_lea.vmem %s1635_s2, %s948_s25 }
  0x17   : > { %vm155_vm0 = vcmp.eq.s32.totalorder %v1249_v1, 0  ;;  %vm158_vm1 = vcmp.eq.s32.totalorder %v1249_v1, 1  ;;  %vm161_vm2 = vcmp.eq.s32.totalorder %v1249_v1, 2  ;;  %v1273_v7 = vld [vmem:[%s145_s28] sm:$0x7] }
  0x18   : > { %v1265_v4 = vsel %vm155_vm0, 1.0, %v1171_v3  ;;  %v1268_v5 = vsel %vm158_vm1, 1.0, %v1171_v3  ;;  %v1271_v6 = vsel %vm161_vm2, 1.0, %v1171_v3 }
  0x19 LB: >> { %vm173_vm3 = vcmp.eq.s32.totalorder %v1249_v1, %v1157_v8  ;;  %v1172_v11 = vmov 0.0   ;;  %vm185_vm4 = vcmask 517121   ;;  %vm192_vm5 = vcmask 518146   ;;  %s1169_s5 = sphi %s1283_s5, %s169_s5   ;;  %v1165_v10 = vphi %v1281_v10, %v231_v10   ;;  %v1161_v9 = vphi %v1279_v9, %v1639_v9   ;;  %v1157_v8 = vphi %v1277_v8, %v251_v8  }
  0x1a   : >> { %v952_v12 = vsel %vm173_vm3, 1.0, %v1172_v11  ;;  %vm177_vm6 = vcmask 516096   ;;  %v207_v27 = vstv %s1169_s5  ;;  %v1305_v35 = vsub.s32 0, %v1251_v2  ;;  %s169_s5 = sadd.s32 1, %s1169_s5  }
  0x1b   : >> { %v182_v13 = vrot.slane %v952_v12, 7  ;;  %v189_v14 = vrot.slane %v952_v12, 6  ;;  %v176_v17 = vmul.f32 %v952_v12, %v1273_v7  ;;  %vm208_vm7 = vcmp.eq.s32.totalorder %v1251_v2, %v207_v27  ;;  %p166_p11 = scmp.ge.s32.totalorder %s169_s5, 8  }
  0x1c   : >> { %v953_v42 = vsel %vm208_vm7, 1.0, %v1172_v11  ;;  %v1173_v62 = vmov (%p166_p11), 0   ;;  %v1174_v63 = vmov (%p166_p11), 2   ;;  %s1175_s6 = smov (%p166_p11), 127   ;;  %s1176_s7 = smov (%p166_p11), 126   ;;  %v1177_v0 = vmov (%p166_p11), 1  }
  0x1d   : >> { %v184_v15 = vmul.f32 %v182_v13, %v1273_v7  ;;  %v191_v16 = vmul.f32 %v189_v14, %v1273_v7  ;;  %v178_v20 = vsel %vm177_vm6, %v176_v17, 0.0  ;;  %1054 = vset.pattern.permute.xlu1 (%p166_p11), %v1173_v62  ;;  %1056 = vset.pattern.permute.xlu0 (%p166_p11), %v1174_v63  ;;  %v286_v13 = vsub.s32 (%p166_p11), 1, %v1251_v2  ;;  %s973_s8 = smul.u32 (%p166_p11), 384, %s1217_s13  ;;  %s840_s14 = sshll.u32 (%p166_p11), %s1275_s4, 4  ;;  %s1587_s14 = int_to_ptr.vmem [resolvable:$true] %s840_s14 }
  0x1e   : > { %v252_v14 = vmul.f32 (%p166_p11), %v1273_v7, %v1273_v7  ;;  %vm312_vm10 = vcmask (%p166_p11), 523264   ;;  %s1593_s13 = scalar_lea.sflag (%p166_p11), [#allocation3], %s133_s21  ;;  %s1077_s23 = scalar_lea.vmem (%p166_p11), %s1587_s14, 384 }
  0x1f   : >> { %v186_v18 = vsel %vm185_vm4, %v184_v15, 0.0  ;;  %v193_v19 = vsel %vm192_vm5, %v191_v16, 0.0  ;;  %v296_v15 = vsub.s32 (%p166_p11), 2, %v1251_v2  ;;  %v1340_v16 = vrot.slane (%p166_p11), %v1273_v7, %v1305_v35  ;;  %s1585_s22 = scalar_lea.hbm (%p166_p11), %s1634_s1, %s973_s8  ;;  %p1078_p12 = scmp.ne.s32.totalorder (%p166_p11), %s1587_s14, %s1077_s23 }
  0x20   : >> { %187 = vadd.xlane.f32.xlu0 %v186_v18  ;;  %194 = vadd.xlane.f32.xlu1 %v193_v19  ;;  %v1343_v17 = vrot.slane (%p166_p11), %v1273_v7, %v286_v13  ;;  %v254_v18 = vrot.slane (%p166_p11), %v252_v14, 1  ;;  %s1178_s24 = smov (%p166_p11), [#allocation2]  }
  0x21   : > { %p1079_p13 = pnand (%p166_p11), %p1078_p12, %p1234_p5  ;;  %s1081_s25 = sshll.u32 (%p166_p11), %s1178_s24, 4  ;;  %s1082_s25 = int_to_ptr.vmem [resolvable:$false] %s1081_s25 }
  0x22   : > { %s1083_s26 = scalar_lea.vmem (%p166_p11), %s1082_s25, 768  ;;  %p1084_p1 = scmp.lt.s32.totalorder (%p166_p11), %s1587_s14, %s1082_s25 }
  0x23   : > { %p1080_p0 = pneg (%p166_p11), %p1079_p13  ;;  %p1085_p2 = scmp.lt.s32.totalorder (%p166_p11), %s1083_s26, %s1077_s23 }
  0x24   : >> { %179 = vadd.xlane.f32.xlu0 %v178_v20  ;;  %v1346_v20 = vrot.slane (%p166_p11), %v1273_v7, %v296_v15 }
  0x25   : > { %p1086_p3 = por (%p166_p11), %p1085_p2, %p1084_p1 }
  0x27   : > { %p1087_p4 = pnand (%p166_p11), %p1086_p3, %p1080_p0 }
  0xa9   : >> { %v188_v21 = vpop.xlane.xlu0 %187  ;;  %v195_v22 = vpop.xlane.xlu1 %194 }
  0xaa   : >> { %v197_v23 = vmul.f32 %v1268_v5, %v188_v21  ;;  %v219_v24 = vsub.f32 %v1273_v7, %v188_v21  ;;  %v202_v25 = vmul.f32 %v1271_v6, %v195_v22  ;;  %v225_v26 = vsub.f32 %v1273_v7, %v195_v22 }
  0xac   : >> { %v220_v28 = vmul.f32 %v219_v24, %v219_v24  ;;  %v226_v29 = vmul.f32 %v225_v26, %v225_v26  ;;  %v199_v31 = vrot.slane %v197_v23, 1  ;;  %v204_v32 = vrot.slane %v202_v25, 2 }
  0xad   : >> { %v180_v30 = vpop.xlane.xlu0 %179  ;;  %v256_v23 = vadd.f32 (%p166_p11), %v254_v18, %v252_v14  ;;  %v257_v24 = vrot.slane (%p166_p11), %v252_v14, 2 }
  0xae   : >> { %v196_v33 = vmul.f32 %v1265_v4, %v180_v30  ;;  %v217_v34 = vsub.f32 %v1273_v7, %v180_v30  ;;  %v222_v36 = vrot.slane %v220_v28, 1  ;;  %v228_v37 = vrot.slane %v226_v29, 2 }
  0xaf   : > { %v259_v27 = vadd.f32 (%p166_p11), %v257_v24, %v256_v23 }
  0xb0   : >> { %v201_v38 = vadd.f32 %v199_v31, %v196_v33  ;;  %v218_v39 = vmul.f32 %v217_v34, %v217_v34 }
  0xb1   : > { %v308_v29 = vrot.slane (%p166_p11), %v259_v27, %v1305_v35 }
  0xb2   : >> { %v206_v40 = vadd.f32 %v204_v32, %v201_v38  ;;  %v224_v41 = vadd.f32 %v222_v36, %v218_v39 }
  0xb4   : >> { %v214_v43 = vrot.slane %v206_v40, %v1305_v35  ;;  %v230_v44 = vadd.f32 %v228_v37, %v224_v41 }
  0xb6   : >> { %v215_v45 = vmul.f32 %v953_v42, %v214_v43  ;;  %v231_v10 = vmin.f32 %v1165_v10, %v230_v44  }
  0xb8   : >> { %v1308_v9 = vadd.f32 %v1161_v9, %v215_v45   ;;  %v232_v47 = vsel %vm177_vm6, %v231_v10, -inf }
  0xb9   : >> { %233 = vmax.xlane.f32.xlu1 %v232_v47 }
  0xba   : >> { %v1638_v46 = vmov %v1308_v9 }
  0xbb   : >> { %v1639_v9 = vmov %v1638_v46  ;;  %v260_v61 = vmul.f32 (%p166_p11), %v1638_v46, %v1638_v46 }
 0x142   : >> { %v234_v48 = vpop.xlane.xlu1 %233 }
 0x143   : >> { %vm235_vm8 = vcmp.eq.f32.partialorder %v231_v10, %v234_v48 }
 0x144   : >> { %v236_v49 = vsel %vm235_vm8, %v1249_v1, 64 }
 0x145   : >> { %v237_v50 = vsel %vm177_vm6, %v236_v49, 2147483647 }
 0x146   : >> { %v239_v51 = vshra.s32 %v237_v50, 16  ;;  %v238_v53 = vand.u32 65535, %v237_v50 }
 0x148   : >> { %v241_v52 = vcvt.s32.f32 %v239_v51  ;;  %v240_v55 = vcvt.s32.f32 %v238_v53 }
 0x14a   : >> { %242 = vmin.xlane.f32.xlu0 %v241_v52 }
 0x160   : > { %262 = vrot.lane.b32.xlu0 (%p166_p11), %v260_v61, %s1175_s6 }
 0x164   : > { %266 = vrot.lane.b32.xlu0 (%p166_p11), %v260_v61, %s1176_s7 }
 0x168   : > { %291 = vperm.xlu0 (%p166_p11), %1056, %v1638_v46  }
 0x16c   : > { %1059 = vset.pattern.permute.xlu0 (%p166_p11), %v1177_v0 }
 0x1d3   : >> { %v243_v54 = vpop.xlane.xlu0 %242 }
 0x1d4   : >> { %vm244_vm9 = vcmp.eq.f32.partialorder %v241_v52, %v243_v54  ;;  %v249_v57 = vcvt.f32.s32 %v243_v54 }
 0x1d5   : >> { %v245_v56 = vsel %vm244_vm9, %v240_v55, inf }
 0x1d6   : >> { %246 = vmin.xlane.f32.xlu1 %v245_v56  ;;  %v250_v59 = vshll.u32 %v249_v57, 16 }
 0x1e7   : > { %272 = vperm.xlu1 (%p166_p11), %1054, %v1638_v46  }
 0x1eb   : > { %1055 = vset.pattern.permute.xlu1 (%p166_p11), %v1177_v0 }
 0x1ec   : > { %281 = vperm.xlu1 (%p166_p11), %1055, %v1638_v46  }
 0x1f0   : > { %1057 = vset.pattern.permute.xlu1 (%p166_p11), %v1173_v62 }
 0x25e   : > { %168 = sbr.rel (!%p166_p11) target bundleno = 25 (0x19), region = 80 }
 0x25f   : >> { %v247_v58 = vpop.xlane.xlu1 %246 }
 0x260   : >> { %v248_v60 = vcvt.f32.s32 %v247_v58 }
 0x262   : >> { %v251_v8 = vadd.s32 %v250_v59, %v248_v60  }
 0x263   : > { %v263_v8 = vpop.permute.xlu0 %262  ;;  %v273_v12 = vpop.permute.xlu1 %272 }
 0x264   : > { %v265_v9 = vadd.f32 %v263_v8, %v260_v61  ;;  %v279_v21 = vmul.f32 %v1340_v16, %v273_v12 }
 0x267   : > { %v267_v10 = vpop.permute.xlu0 %266  ;;  %v282_v19 = vpop.permute.xlu1 %281 }
 0x268   : > { %v269_v11 = vadd.f32 %v267_v10, %v265_v9  ;;  %v288_v22 = vmul.f32 %v1343_v17, %v282_v19 }
 0x26a   : > { %302 = vperm.xlu1 %1057, %v269_v11   ;;  %v289_v2 = vadd.f32 %v288_v22, %v279_v21 }
 0x26b   : > { %v292_v25 = vpop.permute.xlu0 %291 }
 0x26c   : > { %v298_v26 = vmul.f32 %v1346_v20, %v292_v25 }
 0x26e   : > { %1058 = vset.pattern.permute.xlu1 %v1174_v63  ;;  %v299_v28 = vadd.f32 %v298_v26, %v289_v2 }
 0x270   : > { %v310_v31 = vmul.f32 2.0, %v299_v28 }
 0x2e5   : > { %v303_v30 = vpop.permute.xlu1 %302 }
 0x2e6   : > { %v309_v32 = vadd.f32 %v308_v29, %v303_v30 }
 0x2e8   : > { %v311_v7 = vsub.f32 %v309_v32, %v310_v31 }
 0x2ea   : > { %v313_v33 = vsel %vm312_vm10, %v311_v7, inf }
 0x2eb   : > { %314 = vmin.xlane.f32.xlu1 %v313_v33 }
 0x374   : > { %v315_v34 = vpop.xlane.xlu1 %314 }
 0x375   : > { %vm316_vm11 = vcmp.eq.f32.partialorder %v311_v7, %v315_v34 }
 0x376   : > { %v317_v36 = vsel %vm316_vm11, %v1249_v1, 64 }
 0x377   : > { %v318_v37 = vsel %vm312_vm10, %v317_v36, 2147483647 }
 0x378   : > { %v320_v38 = vshra.s32 %v318_v37, 16  ;;  %v319_v40 = vand.u32 65535, %v318_v37 }
 0x37a   : > { %v322_v39 = vcvt.s32.f32 %v320_v38  ;;  %v321_v35 = vcvt.s32.f32 %v319_v40 }
 0x37c   : > { %323 = vmin.xlane.f32.xlu0 %v322_v39 }
 0x405   : > { %v324_v41 = vpop.xlane.xlu0 %323 }
 0x406   : > { %vm325_vm12 = vcmp.eq.f32.partialorder %v322_v39, %v324_v41  ;;  %v330_v43 = vcvt.f32.s32 %v324_v41 }
 0x407   : > { %v326_v42 = vsel %vm325_vm12, %v321_v35, inf }
 0x408   : > { %327 = vmin.xlane.f32.xlu0 %v326_v42  ;;  %v331_v45 = vshll.u32 %v330_v43, 16 }
 0x491   : > { %v328_v44 = vpop.xlane.xlu0 %327 }
 0x492   : > { %v329_v47 = vcvt.f32.s32 %v328_v44 }
 0x494   : > { %v332_v48 = vadd.s32 %v331_v45, %v329_v47 }
 0x496   : > { %vm333_vm13 = vcmp.eq.s32.totalorder %v1249_v1, %v332_v48 }
 0x497   : > { %v1357_v49 = vsel %vm333_vm13, 1.0, %v1171_v3 }
 0x498   : > { %vm372_vm14 = vcmp.gt.f32.partialorder %v1357_v49, 0.0 }
 0x499   : > { %v373_v50 = vsel %vm372_vm14, 1e+30, %v311_v7 }
 0x49a   : > { %v374_v51 = vsel %vm312_vm10, %v373_v50, inf }
 0x49b   : > { %375 = vmin.xlane.f32.xlu1 %v374_v51 }
 0x524   : > { %v376_v52 = vpop.xlane.xlu1 %375 }
 0x525   : > { %vm377_vm15 = vcmp.eq.f32.partialorder %v373_v50, %v376_v52 }
 0x526   : > { %v378_v53 = vsel %vm377_vm15, %v1249_v1, 64 }
 0x527   : > { %v379_v54 = vsel %vm312_vm10, %v378_v53, 2147483647 }
 0x528   : > { %v381_v55 = vshra.s32 %v379_v54, 16  ;;  %v380_v57 = vand.u32 65535, %v379_v54 }
 0x52a   : > { %v383_v56 = vcvt.s32.f32 %v381_v55  ;;  %v382_v59 = vcvt.s32.f32 %v380_v57 }
 0x52c   : > { %384 = vmin.xlane.f32.xlu0 %v383_v56 }
 0x5b5   : > { %v385_v58 = vpop.xlane.xlu0 %384 }
 0x5b6   : > { %vm386_vm0 = vcmp.eq.f32.partialorder %v383_v56, %v385_v58  ;;  %v391_v61 = vcvt.f32.s32 %v385_v58 }
 0x5b7   : > { %v387_v60 = vsel %vm386_vm0, %v382_v59, inf }
 0x5b8   : > { %388 = vmin.xlane.f32.xlu1 %v387_v60  ;;  %v392_v9 = vshll.u32 %v391_v61, 16 }
 0x641   : > { %v389_v8 = vpop.xlane.xlu1 %388 }
 0x642   : > { %v390_v10 = vcvt.f32.s32 %v389_v8 }
 0x644   : > { %v393_v11 = vadd.s32 %v392_v9, %v390_v10 }
 0x646   : > { %vm394_vm1 = vcmp.eq.s32.totalorder %v1249_v1, %v393_v11 }
 0x647   : > { %v1365_v12 = vsel %vm394_vm1, 1.0, %v1171_v3 }
 0x648   : > { %vm433_vm2 = vcmp.gt.f32.partialorder %v1365_v12, 0.0 }
 0x649   : > { %v434_v13 = vsel %vm433_vm2, 1e+30, %v373_v50 }
 0x64a   : > { %v435_v14 = vsel %vm312_vm10, %v434_v13, inf }
 0x64b   : > { %436 = vmin.xlane.f32.xlu0 %v435_v14 }
 0x6d4   : > { %v437_v15 = vpop.xlane.xlu0 %436 }
 0x6d5   : > { %vm438_vm3 = vcmp.eq.f32.partialorder %v434_v13, %v437_v15 }
 0x6d6   : > { %v439_v18 = vsel %vm438_vm3, %v1249_v1, 64 }
 0x6d7   : > { %v440_v19 = vsel %vm312_vm10, %v439_v18, 2147483647 }
 0x6d8   : > { %v442_v21 = vshra.s32 %v440_v19, 16  ;;  %v441_v23 = vand.u32 65535, %v440_v19 }
 0x6da   : > { %v444_v22 = vcvt.s32.f32 %v442_v21  ;;  %v443_v25 = vcvt.s32.f32 %v441_v23 }
 0x6dc   : > { %445 = vmin.xlane.f32.xlu1 %v444_v22 }
 0x765   : > { %v446_v24 = vpop.xlane.xlu1 %445 }
 0x766   : > { %vm447_vm4 = vcmp.eq.f32.partialorder %v444_v22, %v446_v24  ;;  %v452_v26 = vcvt.f32.s32 %v446_v24 }
 0x767   : > { %v448_v2 = vsel %vm447_vm4, %v443_v25, inf }
 0x768   : > { %449 = vmin.xlane.f32.xlu0 %v448_v2  ;;  %v453_v28 = vshll.u32 %v452_v26, 16 }
 0x7f1   : > { %v450_v27 = vpop.xlane.xlu0 %449 }
 0x7f2   : > { %v451_v29 = vcvt.f32.s32 %v450_v27 }
 0x7f4   : > { %v454_v30 = vadd.s32 %v453_v28, %v451_v29 }
 0x7f6   : > { %vm455_vm5 = vcmp.eq.s32.totalorder %v1249_v1, %v454_v30 }
 0x7f7   : > { %v1373_v31 = vsel %vm455_vm5, 1.0, %v1171_v3 }
 0x7f8   : > { %vm494_vm6 = vcmp.gt.f32.partialorder %v1373_v31, 0.0 }
 0x7f9   : > { %v495_v32 = vsel %vm494_vm6, 1e+30, %v434_v13 }
 0x7fa   : > { %v496_v7 = vsel %vm312_vm10, %v495_v32, inf }
 0x7fb   : > { %497 = vmin.xlane.f32.xlu1 %v496_v7 }
 0x884   : > { %v498_v33 = vpop.xlane.xlu1 %497 }
 0x885   : > { %vm499_vm7 = vcmp.eq.f32.partialorder %v495_v32, %v498_v33 }
 0x886   : > { %v500_v34 = vsel %vm499_vm7, %v1249_v1, 64 }
 0x887   : > { %v501_v36 = vsel %vm312_vm10, %v500_v34, 2147483647 }
 0x888   : > { %v503_v37 = vshra.s32 %v501_v36, 16  ;;  %v502_v39 = vand.u32 65535, %v501_v36 }
 0x88a   : > { %v505_v38 = vcvt.s32.f32 %v503_v37  ;;  %v504_v41 = vcvt.s32.f32 %v502_v39 }
 0x88c   : > { %506 = vmin.xlane.f32.xlu0 %v505_v38 }
 0x915   : > { %v507_v40 = vpop.xlane.xlu0 %506 }
 0x916   : > { %vm508_vm8 = vcmp.eq.f32.partialorder %v505_v38, %v507_v40  ;;  %v513_v42 = vcvt.f32.s32 %v507_v40 }
 0x917   : > { %v509_v35 = vsel %vm508_vm8, %v504_v41, inf  ;;  %v336_v41 = vmul.f32 %v1357_v49, %v1340_v16 }
 0x918   : > { %510 = vmin.xlane.f32.xlu1 %v509_v35  ;;  %v514_v44 = vshll.u32 %v513_v42, 16  ;;  %v344_v42 = vmul.f32 %v1357_v49, %v1346_v20 }
 0x919   : > { %v337_v35 = vsel %vm312_vm10, %v336_v41, 0.0 }
 0x9a1   : > { %v511_v43 = vpop.xlane.xlu1 %510 }
 0x9a2   : > { %v512_v45 = vcvt.f32.s32 %v511_v43  ;;  %v345_v43 = vsel %vm312_vm10, %v344_v42, 0.0 }
 0x9a4   : > { %v515_v47 = vadd.s32 %v514_v44, %v512_v45  ;;  %v397_v44 = vmul.f32 %v1365_v12, %v1340_v16 }
 0x9a6   : > { %vm516_vm9 = vcmp.eq.s32.totalorder %v1249_v1, %v515_v47  ;;  %v398_v45 = vsel %vm312_vm10, %v397_v44, 0.0 }
 0x9a7   : > { %v1381_v48 = vsel %vm516_vm9, 1.0, %v1171_v3 }
 0x9a8   : > { %vm558_vm11 = vcmp.gt.f32.partialorder %v1381_v48, 0.0 }
 0x9a9   : > { %v559_v50 = vsel %vm558_vm11, 1e+30, %v495_v32  ;;  %vm531_vm11 = vcmp.eq.s32.totalorder %v1249_v1, 3 }
 0x9aa   : > { %v560_v51 = vsel %vm312_vm10, %v559_v50, inf }
 0x9ab   : > { %561 = vmin.xlane.f32.xlu0 %v560_v51 }
 0xa34   : > { %v562_v52 = vpop.xlane.xlu0 %561 }
 0xa35   : > { %vm563_vm12 = vcmp.eq.f32.partialorder %v559_v50, %v562_v52 }
 0xa36   : > { %v564_v53 = vsel %vm563_vm12, %v1249_v1, 64 }
 0xa37   : > { %v565_v54 = vsel %vm312_vm10, %v564_v53, 2147483647  ;;  %v340_v53 = vmul.f32 %v1357_v49, %v1343_v17 }
 0xa38   : > { %v567_v55 = vshra.s32 %v565_v54, 16  ;;  %v566_v57 = vand.u32 65535, %v565_v54 }
 0xa39   : > { %v341_v54 = vsel %vm312_vm10, %v340_v53, 0.0 }
 0xa3a   : > { %v569_v56 = vcvt.s32.f32 %v567_v55  ;;  %v568_v59 = vcvt.s32.f32 %v566_v57  ;;  %v401_v55 = vmul.f32 %v1365_v12, %v1343_v17 }
 0xa3c   : > { %570 = vmin.xlane.f32.xlu1 %v569_v56 }
 0xac5   : > { %v571_v58 = vpop.xlane.xlu1 %570 }
 0xac6   : > { %vm572_vm13 = vcmp.eq.f32.partialorder %v569_v56, %v571_v58  ;;  %v577_v61 = vcvt.f32.s32 %v571_v58  ;;  %v402_v56 = vsel %vm312_vm10, %v401_v55, 0.0  ;;  %v523_v55 = vmul.f32 %v1381_v48, %v1343_v17 }
 0xac7   : > { %v573_v60 = vsel %vm572_vm13, %v568_v59, inf  ;;  %vm595_vm13 = vcmp.eq.s32.totalorder %v1249_v1, 4 }
 0xac8   : > { %574 = vmin.xlane.f32.xlu0 %v573_v60  ;;  %v578_v9 = vshll.u32 %v577_v61, 16 }
 0xb51   : > { %v575_v8 = vpop.xlane.xlu0 %574 }
 0xb52   : > { %v576_v10 = vcvt.f32.s32 %v575_v8 }
 0xb54   : > { %v579_v11 = vadd.s32 %v578_v9, %v576_v10  ;;  %v405_v10 = vmul.f32 %v1365_v12, %v1346_v20 }
 0xb56   : > { %vm580_vm14 = vcmp.eq.s32.totalorder %v1249_v1, %v579_v11  ;;  %v406_v11 = vsel %vm312_vm10, %v405_v10, 0.0 }
 0xb57   : > { %v1389_v13 = vsel %vm580_vm14, 1.0, %v1171_v3  ;;  %vm659_vm14 = vcmp.eq.s32.totalorder %v1249_v1, 5 }
 0xb58   : > { %vm622_vm15 = vcmp.gt.f32.partialorder %v1389_v13, 0.0 }
 0xb59   : > { %v623_v14 = vsel %vm622_vm15, 1e+30, %v559_v50  ;;  %vm723_vm15 = vcmp.eq.s32.totalorder %v1249_v1, 6 }
 0xb5a   : > { %v624_v15 = vsel %vm312_vm10, %v623_v14, inf }
 0xb5b   : > { %625 = vmin.xlane.f32.xlu1 %v624_v15 }
 0xbe4   : > { %v626_v18 = vpop.xlane.xlu1 %625 }
 0xbe5   : > { %vm627_vm0 = vcmp.eq.f32.partialorder %v623_v14, %v626_v18 }
 0xbe6   : > { %v628_v19 = vsel %vm627_vm0, %v1249_v1, 64  ;;  %vm787_vm0 = vcmp.eq.s32.totalorder %v1249_v1, 7 }
 0xbe7   : > { %v629_v21 = vsel %vm312_vm10, %v628_v19, 2147483647 }
 0xbe8   : > { %v631_v22 = vshra.s32 %v629_v21, 16  ;;  %v630_v24 = vand.u32 65535, %v629_v21 }
 0xbea   : > { %v633_v23 = vcvt.s32.f32 %v631_v22  ;;  %v632_v2 = vcvt.s32.f32 %v630_v24 }
 0xbec   : > { %634 = vmin.xlane.f32.xlu0 %v633_v23 }
 0xc75   : > { %v635_v25 = vpop.xlane.xlu0 %634 }
 0xc76   : > { %vm636_vm1 = vcmp.eq.f32.partialorder %v633_v23, %v635_v25  ;;  %v641_v27 = vcvt.f32.s32 %v635_v25 }
 0xc77   : > { %v637_v26 = vsel %vm636_vm1, %v632_v2, inf  ;;  %vm814_vm1 = vcmask 64512  }
 0xc78   : > { %638 = vmin.xlane.f32.xlu1 %v637_v26  ;;  %v642_v29 = vshll.u32 %v641_v27, 16 }
 0xd01   : > { %v639_v28 = vpop.xlane.xlu1 %638 }
 0xd02   : > { %v640_v30 = vcvt.f32.s32 %v639_v28 }
 0xd04   : > { %v643_v32 = vadd.s32 %v642_v29, %v640_v30  ;;  %v458_v29 = vmul.f32 %v1373_v31, %v1340_v16 }
 0xd06   : > { %vm644_vm2 = vcmp.eq.s32.totalorder %v1249_v1, %v643_v32  ;;  %v459_v30 = vsel %vm312_vm10, %v458_v29, 0.0  ;;  %v466_v32 = vmul.f32 %v1373_v31, %v1346_v20 }
 0xd07   : > { %v1397_v7 = vsel %vm644_vm2, 1.0, %v1171_v3 }
 0xd08   : > { %vm686_vm3 = vcmp.gt.f32.partialorder %v1397_v7, 0.0  ;;  %v647_v10 = vmul.f32 %v1397_v7, %v1340_v16 }
 0xd09   : > { %v687_v33 = vsel %vm686_vm3, 1e+30, %v623_v14 }
 0xd0a   : > { %v688_v34 = vsel %vm312_vm10, %v687_v33, inf }
 0xd0b   : > { %689 = vmin.xlane.f32.xlu0 %v688_v34  ;;  %v462_v34 = vmul.f32 %v1373_v31, %v1343_v17 }
 0xd94   : > { %v690_v36 = vpop.xlane.xlu0 %689 }
 0xd95   : > { %vm691_vm4 = vcmp.eq.f32.partialorder %v687_v33, %v690_v36  ;;  %v463_v36 = vsel %vm312_vm10, %v462_v34, 0.0 }
 0xd96   : > { %v692_v37 = vsel %vm691_vm4, %v1249_v1, 64 }
 0xd97   : > { %v693_v38 = vsel %vm312_vm10, %v692_v37, 2147483647  ;;  %v519_v37 = vmul.f32 %v1381_v48, %v1340_v16 }
 0xd98   : > { %v695_v39 = vshra.s32 %v693_v38, 16  ;;  %v694_v47 = vand.u32 65535, %v693_v38 }
 0xd9a   : > { %v697_v40 = vcvt.s32.f32 %v695_v39  ;;  %v696_v51 = vcvt.s32.f32 %v694_v47  ;;  %v520_v39 = vsel %vm312_vm10, %v519_v37, 0.0 }
 0xd9c   : > { %698 = vmin.xlane.f32.xlu1 %v697_v40 }
 0xda0   : > { %338 = vadd.xlane.f32.xlu1 %v337_v35 }
 0xda4   : > { %346 = vadd.xlane.f32.xlu1 %v345_v43 }
 0xda8   : > { %399 = vadd.xlane.f32.xlu1 %v398_v45 }
 0xe25   : > { %v699_v50 = vpop.xlane.xlu1 %698 }
 0xe26   : > { %vm700_vm5 = vcmp.eq.f32.partialorder %v697_v40, %v699_v50  ;;  %v705_v57 = vcvt.f32.s32 %v699_v50  ;;  %v527_v40 = vmul.f32 %v1381_v48, %v1346_v20  ;;  %v591_v48 = vmul.f32 %v1389_v13, %v1346_v20 }
 0xe27   : > { %v701_v52 = vsel %vm700_vm5, %v696_v51, inf }
 0xe28   : > { %702 = vmin.xlane.f32.xlu0 %v701_v52  ;;  %v706_v59 = vshll.u32 %v705_v57, 16  ;;  %v528_v41 = vsel %vm312_vm10, %v527_v40, 0.0  ;;  %v583_v57 = vmul.f32 %v1389_v13, %v1340_v16 }
 0xe29   : > { %v339_v14 = vpop.xlane.xlu1 %338 }
 0xe2a   : > { %v348_v31 = vsub.f32 %v339_v14, %v1638_v46  ;;  %v655_v14 = vmul.f32 %v1397_v7, %v1346_v20 }
 0xe2c   : > { %342 = vadd.xlane.f32.xlu0 %v341_v54 }
 0xe2d   : > { %v347_v15 = vpop.xlane.xlu1 %346 }
 0xe2e   : > { %v364_v18 = vsub.f32 %v347_v15, %v1638_v46 }
 0xe30   : > { %403 = vadd.xlane.f32.xlu0 %v402_v56  ;;  %v524_v56 = vsel %vm312_vm10, %v523_v55, 0.0 }
 0xe31   : > { %v400_v19 = vpop.xlane.xlu1 %399 }
 0xe32   : > { %v409_v38 = vsub.f32 %v400_v19, %v1638_v46 }
 0xeb1   : > { %v703_v58 = vpop.xlane.xlu0 %702 }
 0xeb2   : > { %v704_v60 = vcvt.f32.s32 %v703_v58  ;;  %v584_v58 = vsel %vm312_vm10, %v583_v57, 0.0 }
 0xeb4   : > { %v707_v61 = vadd.s32 %v706_v59, %v704_v60  ;;  %v587_v59 = vmul.f32 %v1389_v13, %v1343_v17  ;;  %v656_v13 = vsel %vm312_vm10, %v655_v14, 0.0 }
 0xeb5   : > { %v1438_v26 = vpop.xlane.xlu0 %342 }
 0xeb6   : > { %vm708_vm6 = vcmp.eq.s32.totalorder %v1249_v1, %v707_v61  ;;  %v588_v60 = vsel %vm312_vm10, %v587_v59, 0.0  ;;  %v651_v61 = vmul.f32 %v1397_v7, %v1343_v17 }
 0xeb7   : > { %v1420_v8 = vsel %vm708_vm6, 1.0, %v1171_v3 }
 0xeb8   : > { %vm750_vm7 = vcmp.gt.f32.partialorder %v1420_v8, 0.0  ;;  %v715_v7 = vmul.f32 %v1420_v8, %v1343_v17 }
 0xeb9   : > { %v751_v49 = vsel %vm750_vm7, 1e+30, %v687_v33  ;;  %v404_v27 = vpop.xlane.xlu0 %403  ;;  %v467_v33 = vsel %vm312_vm10, %v466_v32, 0.0 }
 0xeba   : > { %v752_v9 = vsel %vm312_vm10, %v751_v49, inf  ;;  %v417_v28 = vsub.f32 %v404_v27, %v1638_v46  ;;  %v356_v27 = vsub.f32 %v1438_v26, %v1638_v46 }
 0xebb   : > { %753 = vmin.xlane.f32.xlu1 %v752_v9  ;;  %v592_v9 = vsel %vm312_vm10, %v591_v48, 0.0 }
 0xebf   : > { %407 = vadd.xlane.f32.xlu1 %v406_v11  ;;  %v648_v11 = vsel %vm312_vm10, %v647_v10, 0.0 }
 0xed0   : > { %367 = vperm.xlu1 %1058, %v364_v18  }
 0xf44   : > { %v754_v21 = vpop.xlane.xlu1 %753 }
 0xf45   : > { %vm755_vm8 = vcmp.eq.f32.partialorder %v751_v49, %v754_v21  ;;  %v652_v49 = vsel %vm312_vm10, %v651_v61, 0.0  ;;  %v711_v21 = vmul.f32 %v1420_v8, %v1340_v16 }
 0xf46   : > { %v756_v22 = vsel %vm755_vm8, %v1249_v1, 64 }
 0xf47   : > { %v1430_v23 = vsel %vm312_vm10, %v756_v22, 2147483647  ;;  %v712_v22 = vsel %vm312_vm10, %v711_v21, 0.0 }
 0xf48   : > { %v408_v24 = vpop.xlane.xlu1 %407  ;;  %v759_v12 = vshra.s32 %v1430_v23, 16  ;;  %v758_v15 = vand.u32 65535, %v1430_v23  ;;  %v716_v23 = vsel %vm312_vm10, %v715_v7, 0.0 }
 0xf49   : > { %v425_v25 = vsub.f32 %v408_v24, %v1638_v46 }
 0xf4a   : > { %v1434_v2 = vcvt.s32.f32 %v759_v12  ;;  %v760_v18 = vcvt.s32.f32 %v758_v15  ;;  %v719_v12 = vmul.f32 %v1420_v8, %v1346_v20 }
 0xf4b   : > { %428 = vperm.xlu1 %1058, %v425_v25  }
 0xf4c   : > { %762 = vmin.xlane.f32.xlu0 %v1434_v2  ;;  %v1459_v35 = vpop.permute.xlu1 %367 }
 0xf4d   : > { %v370_v32 = vmul.f32 %v1265_v4, %v1459_v35 }
 0xf4f   : > { %1060 = vset.pattern.permute.xlu1 %v1173_v62 }
 0xf62   : > { %420 = vperm.xlu0 %1059, %v417_v28  }
 0xf66   : > { %1062 = vset.pattern.permute.xlu0 %v1173_v62 }
 0xf6f   : > { %460 = vadd.xlane.f32.xlu1 %v459_v30 }
 0xf73   : > { %468 = vadd.xlane.f32.xlu1 %v467_v33 }
 0xf81   : > { %464 = vadd.xlane.f32.xlu0 %v463_v36 }
 0xf84   : > { %412 = vperm.xlu1 %1060, %v409_v38  }
 0xf85   : > { %521 = vadd.xlane.f32.xlu0 %v520_v39 }
 0xf89   : > { %529 = vadd.xlane.f32.xlu0 %v528_v41  ;;  %v1520_v41 = vsel %vm531_vm11, 1.0, %v1171_v3 }
 0xf9f   : > { %351 = vperm.xlu0 %1062, %v348_v31  }
 0xfc6   : > { %v429_v42 = vpop.permute.xlu1 %428 }
 0xfc7   : > { %v431_v8 = vmul.f32 %v1268_v5, %v429_v42 }
 0xfc9   : > { %v432_v34 = vadd.f32 %v431_v8, %v370_v32 }
 0xfd5   : > { %v1464_v50 = vpop.xlane.xlu0 %762 }
 0xfd6   : > { %vm764_vm9 = vcmp.eq.f32.partialorder %v1434_v2, %v1464_v50  ;;  %v720_v2 = vsel %vm312_vm10, %v719_v12, 0.0  ;;  %v769_v57 = vcvt.f32.s32 %v1464_v50 }
 0xfd7   : > { %v765_v19 = vsel %vm764_vm9, %v760_v18, inf }
 0xfd8   : > { %v770_v59 = vshll.u32 %v769_v57, 16  ;;  %v966_v57 = vsel %vm787_vm0, 1.0, %v1171_v3 }
 0xfdd   : > { %v1467_v51 = vpop.permute.xlu0 %420 }
 0xfde   : > { %v423_v18 = vmul.f32 %v1268_v5, %v1467_v51 }
 0xff8   : > { %v461_v43 = vpop.xlane.xlu1 %460 }
 0xff9   : > { %v470_v44 = vsub.f32 %v461_v43, %v1638_v46 }
 0xffb   : > { %473 = vperm.xlu1 %1060, %v470_v44  }
 0xffc   : > { %v469_v45 = vpop.xlane.xlu1 %468 }
 0xffd   : > { %v486_v47 = vsub.f32 %v469_v45, %v1638_v46 }
 0xfff   : > { %1061 = vset.pattern.permute.xlu1 %v1174_v63 }
0x1000   : > { %489 = vperm.xlu1 %1061, %v486_v47   ;;  %v413_v29 = vpop.permute.xlu1 %412 }
0x1001   : > { %v415_v39 = vmul.f32 %v1268_v5, %v413_v29 }
0x1004   : > { %1063 = vset.pattern.permute.xlu1 %v1177_v0 }
0x100a   : > { %v465_v52 = vpop.xlane.xlu0 %464 }
0x100b   : > { %v478_v28 = vsub.f32 %v465_v52, %v1638_v46 }
0x100e   : > { %v522_v53 = vpop.xlane.xlu0 %521 }
0x100f   : > { %v534_v54 = vsub.f32 %v522_v53, %v1638_v46 }
0x1011   : > { %537 = vperm.xlu0 %1062, %v534_v54  }
0x1012   : > { %v530_v24 = vpop.xlane.xlu0 %529 }
0x1013   : > { %v550_v25 = vsub.f32 %v530_v24, %v1638_v46 }
0x1015   : > { %1064 = vset.pattern.permute.xlu0 %v1174_v63 }
0x101a   : > { %v352_v38 = vpop.permute.xlu0 %351 }
0x101b   : > { %v354_v26 = vmul.f32 %v1265_v4, %v352_v38 }
0x101d   : > { %v416_v31 = vadd.f32 %v415_v39, %v354_v26 }
0x1024   : > { %525 = vadd.xlane.f32.xlu1 %v524_v56 }
0x1028   : > { %585 = vadd.xlane.f32.xlu1 %v584_v58 }
0x102c   : > { %589 = vadd.xlane.f32.xlu1 %v588_v60 }
0x1030   : > { %653 = vadd.xlane.f32.xlu0 %v652_v49  ;;  %593 = vadd.xlane.f32.xlu1 %v592_v9 }
0x1034   : > { %649 = vadd.xlane.f32.xlu1 %v648_v11 }
0x1038   : > { %657 = vadd.xlane.f32.xlu1 %v656_v13 }
0x103c   : > { %766 = vmin.xlane.f32.xlu1 %v765_v19 }
0x1040   : > { %713 = vadd.xlane.f32.xlu1 %v712_v22 }
0x1044   : > { %717 = vadd.xlane.f32.xlu1 %v716_v23 }
0x1046   : > { %553 = vperm.xlu0 %1064, %v550_v25  }
0x1048   : > { %721 = vadd.xlane.f32.xlu1 %v720_v2 }
0x104a   : > { %1072 = vset.pattern.permute.xlu0 %v1177_v0 }
0x1059   : > { %359 = vperm.xlu1 %1063, %v356_v27  }
0x105d   : > { %481 = vperm.xlu1 %1063, %v478_v28  }
0x1076   : > { %v474_v30 = vpop.permute.xlu1 %473 }
0x1077   : > { %v476_v40 = vmul.f32 %v1271_v6, %v474_v30 }
0x1079   : > { %v477_v42 = vadd.f32 %v476_v40, %v416_v31 }
0x107b   : > { %v490_v33 = vpop.permute.xlu1 %489 }
0x107c   : > { %v492_v36 = vmul.f32 %v1271_v6, %v490_v33 }
0x107e   : > { %v1513_v37 = vadd.f32 %v492_v36, %v432_v34 }
0x108c   : > { %v538_v35 = vpop.permute.xlu0 %537 }
0x108d   : > { %v540_v43 = vmul.f32 %v1520_v41, %v538_v35  ;;  %v960_v35 = vsel %vm595_vm13, 1.0, %v1171_v3 }
0x108f   : > { %v1523_v44 = vadd.f32 %v540_v43, %v477_v42  ;;  %v962_v43 = vsel %vm659_vm14, 1.0, %v1171_v3 }
0x10ad   : > { %v526_v45 = vpop.xlane.xlu1 %525 }
0x10ae   : > { %v542_v47 = vsub.f32 %v526_v45, %v1638_v46 }
0x10b0   : > { %545 = vperm.xlu1 %1063, %v542_v47  }
0x10b1   : > { %v586_v52 = vpop.xlane.xlu1 %585 }
0x10b2   : > { %v598_v24 = vsub.f32 %v586_v52, %v1638_v46  ;;  %v964_v52 = vsel %vm723_vm15, 1.0, %v1171_v3 }
0x10b4   : > { %1065 = vset.pattern.permute.xlu1 %v1173_v62 }
0x10b5   : > { %v590_v53 = vpop.xlane.xlu1 %589 }
0x10b9   : > { %v594_v54 = vpop.xlane.xlu1 %593 }
0x10ba   : > { %v614_v5 = vsub.f32 %v594_v54, %v1638_v46 }
0x10bd   : > { %v650_v55 = vpop.xlane.xlu1 %649 }
0x10c1   : > { %v658_v56 = vpop.xlane.xlu1 %657 }
0x10c2   : > { %v678_v23 = vsub.f32 %v658_v56, %v1638_v46 }
0x10c5   : > { %v767_v58 = vpop.xlane.xlu1 %766 }
0x10c6   : > { %v768_v60 = vcvt.f32.s32 %v767_v58 }
0x10c8   : > { %v771_v61 = vadd.s32 %v770_v59, %v768_v60 }
0x10c9   : > { %v714_v48 = vpop.xlane.xlu1 %713 }
0x10ca   : > { %vm772_vm12 = vcmp.eq.s32.totalorder %v1249_v1, %v771_v61  ;;  %v726_v12 = vsub.f32 %v714_v48, %v1638_v46 }
0x10cb   : > { %v965_v49 = vsel %vm772_vm12, 1.0, %v1171_v3 }
0x10cc   : > { %v775_v11 = vmul.f32 %v965_v49, %v1340_v16  ;;  %v779_v50 = vmul.f32 %v965_v49, %v1343_v17  ;;  %v783_v22 = vmul.f32 %v965_v49, %v1346_v20  ;;  %v606_v17 = vsub.f32 %v590_v53, %v1638_v46  ;;  %v654_v20 = vpop.xlane.xlu0 %653 }
0x10cd   : > { %v718_v9 = vpop.xlane.xlu1 %717  ;;  %v670_v51 = vsub.f32 %v654_v20, %v1638_v46 }
0x10ce   : > { %v734_v10 = vsub.f32 %v718_v9, %v1638_v46  ;;  %v776_v15 = vsel %vm312_vm10, %v775_v11, 0.0  ;;  %v780_v21 = vsel %vm312_vm10, %v779_v50, 0.0  ;;  %v784_v16 = vsel %vm312_vm10, %v783_v22, 0.0 }
0x10cf   : > { %vm820_vm10 = vcmask 23552  }
0x10d0   : > { %737 = vperm.xlu0 %1072, %v734_v10   ;;  %821 = vst.msk [vmem:[%s1262_s3] sm:$0xff] %vm820_vm10, %v1638_v46  ;;  %v554_v47 = vpop.permute.xlu0 %553 }
0x10d1   : > { %v722_v14 = vpop.xlane.xlu1 %721  ;;  %v556_v58 = vmul.f32 %v1520_v41, %v554_v47 }
0x10d2   : > { %v742_v25 = vsub.f32 %v722_v14, %v1638_v46 }
0x10d4   : > { %777 = vadd.xlane.f32.xlu1 %v776_v15 }
0x10d5   : > { %v360_v13 = vpop.permute.xlu1 %359 }
0x10d6   : > { %v362_v19 = vmul.f32 %v1265_v4, %v360_v13  ;;  %v662_v4 = vsub.f32 %v650_v55, %v1638_v46 }
0x10d8   : > { %v424_v7 = vadd.f32 %v423_v18, %v362_v19  ;;  %781 = vadd.xlane.f32.xlu1 %v780_v21 }
0x10d9   : > { %v482_v2 = vpop.permute.xlu1 %481 }
0x10dc   : > { %785 = vadd.xlane.f32.xlu1 %v784_v16 }
0x10ed   : > { %601 = vperm.xlu1 %1065, %v598_v24  }
0x10f1   : > { %1066 = vset.pattern.permute.xlu1 %v1177_v0 }
0x10f2   : > { %609 = vperm.xlu1 %1066, %v606_v17  }
0x10f6   : > { %1067 = vset.pattern.permute.xlu1 %v1174_v63 }
0x10f7   : > { %617 = vperm.xlu1 %1067, %v614_v5  }
0x10fb   : > { %1068 = vset.pattern.permute.xlu1 %v1173_v62 }
0x10fc   : > { %665 = vperm.xlu1 %1068, %v662_v4  }
0x1100   : > { %1069 = vset.pattern.permute.xlu1 %v1177_v0  ;;  %v484_v0 = vmul.f32 %v1271_v6, %v482_v2 }
0x1101   : > { %673 = vperm.xlu1 %1069, %v670_v51  }
0x1102   : > { %v485_v28 = vadd.f32 %v484_v0, %v424_v7 }
0x1105   : > { %1070 = vset.pattern.permute.xlu1 %v1174_v63 }
0x1106   : > { %681 = vperm.xlu1 %1070, %v678_v23  }
0x110a   : > { %1071 = vset.pattern.permute.xlu1 %v1173_v62 }
0x110b   : > { %729 = vperm.xlu1 %1071, %v726_v12  }
0x110f   : > { %1073 = vset.pattern.permute.xlu1 %v1174_v63 }
0x1110   : > { %745 = vperm.xlu1 %1073, %v742_v25  }
0x1114   : > { %1074 = vset.pattern.permute.xlu1 %v1173_v62 }
0x112b   : > { %v546_v27 = vpop.permute.xlu1 %545 }
0x112c   : > { %v548_v29 = vmul.f32 %v1520_v41, %v546_v27 }
0x112e   : > { %v549_v30 = vadd.f32 %v548_v29, %v485_v28 }
0x114b   : > { %v738_v61 = vpop.permute.xlu0 %737 }
0x114c   : > { %v740_v11 = vmul.f32 %v964_v52, %v738_v61 }
0x115d   : > { %v778_v8 = vpop.xlane.xlu1 %777 }
0x115e   : > { %v790_v32 = vsub.f32 %v778_v8, %v1638_v46 }
0x1160   : > { %793 = vperm.xlu1 %1074, %v790_v32  }
0x1161   : > { %v782_v33 = vpop.xlane.xlu1 %781 }
0x1162   : > { %v798_v34 = vsub.f32 %v782_v33, %v1638_v46 }
0x1164   : > { %801 = vperm.xlu0 %1072, %v798_v34   ;;  %1075 = vset.pattern.permute.xlu1 %v1174_v63 }
0x1165   : > { %v786_v62 = vpop.xlane.xlu1 %785 }
0x1166   : > { %v806_v36 = vsub.f32 %v786_v62, %v1638_v46 }
0x1168   : > { %809 = vperm.xlu1 %1075, %v806_v36   ;;  %1076 = vset.pattern.permute.xlu0 %v1174_v63 }
0x1169   : > { %v602_v6 = vpop.permute.xlu1 %601 }
0x116a   : > { %v604_v63 = vmul.f32 %v960_v35, %v602_v6 }
0x116c   : > { %v605_v54 = vadd.f32 %v604_v63, %v1523_v44  ;;  %v557_v44 = vadd.f32 %v556_v58, %v1513_v37 }
0x116d   : > { %v610_v38 = vpop.permute.xlu1 %609 }
0x116e   : > { %v612_v45 = vmul.f32 %v960_v35, %v610_v38 }
0x1170   : > { %v613_v59 = vadd.f32 %v612_v45, %v549_v30 }
0x1172   : > { %v618_v26 = vpop.permute.xlu1 %617 }
0x1173   : > { %v620_v49 = vmul.f32 %v960_v35, %v618_v26 }
0x1175   : > { %v621_v41 = vadd.f32 %v620_v49, %v557_v44 }
0x1177   : > { %v666_v39 = vpop.permute.xlu1 %665 }
0x1178   : > { %v668_v46 = vmul.f32 %v962_v43, %v666_v39 }
0x117a   : > { %v669_v60 = vadd.f32 %v668_v46, %v605_v54 }
0x117c   : > { %v674_v40 = vpop.permute.xlu1 %673 }
0x117d   : > { %v676_v55 = vmul.f32 %v962_v43, %v674_v40 }
0x117f   : > { %v677_v1 = vadd.f32 %v676_v55, %v613_v59 }
0x1181   : > { %v682_v31 = vpop.permute.xlu1 %681  ;;  %v741_v13 = vadd.f32 %v740_v11, %v677_v1 }
0x1182   : > { %v684_v14 = vmul.f32 %v962_v43, %v682_v31 }
0x1184   : > { %v685_v19 = vadd.f32 %v684_v14, %v621_v41 }
0x1186   : > { %v730_v42 = vpop.permute.xlu1 %729 }
0x1187   : > { %v732_v56 = vmul.f32 %v964_v52, %v730_v42 }
0x1189   : > { %v733_v9 = vadd.f32 %v732_v56, %v669_v60 }
0x118b   : > { %v746_v53 = vpop.permute.xlu1 %745 }
0x118c   : > { %v748_v50 = vmul.f32 %v964_v52, %v746_v53 }
0x118e   : > { %v749_v37 = vadd.f32 %v748_v50, %v685_v19 }
0x11db   : > { %v794_v48 = vpop.permute.xlu1 %793 }
0x11dc   : > { %v796_v10 = vmul.f32 %v966_v57, %v794_v48 }
0x11de   : > { %v797_v3 = vadd.f32 %v796_v10, %v733_v9 }
0x11df   : > { %v802_v15 = vpop.permute.xlu0 %801 }
0x11e0   : > { %815 = vst.msk [vmem:[%s1275_s4] sm:$0xff] %vm814_vm1, %v797_v3  ;;  %v804_v18 = vmul.f32 %v966_v57, %v802_v15 }
0x11e2   : > { %v805_v21 = vadd.f32 %v804_v18, %v741_v13 }
0x11e3   : > { %v810_v22 = vpop.permute.xlu1 %809 }
0x11e4   : > { %967 = vst.msk [vmem:[%s1275_s4 + $0x8] sm:$0xff] %vm814_vm1, %v805_v21  ;;  %v812_v7 = vmul.f32 %v966_v57, %v810_v22 }
0x11e6   : > { %v813_v16 = vadd.f32 %v812_v7, %v749_v37 }
0x11e8   : > { %968 = vst.msk [vmem:[%s1275_s4 + $0x10] sm:$0xff] %vm814_vm1, %v813_v16 }
0x11e9   : > { %1090 = shalt.err (!%p1087_p4)
}
0x11ea   : > { %s1091_s21 = scalar_lea.hbm %s1585_s22, 384  ;;  %s1095_s29 = scalar_lea.hbm %s1634_s1, 768 }
0x11eb   : > { %p1092_p7 = scmp.ne.s32.totalorder %s1585_s22, %s1091_s21  ;;  %p1096_p10 = scmp.lt.s32.totalorder %s1585_s22, %s1634_s1 }
0x11ec   : > { %p1097_p11 = scmp.lt.s32.totalorder %s1095_s29, %s1091_s21 }
0x11ed   : > { %p1093_p8 = pnand %p1092_p7, %p1234_p5 }
0x11ee   : > { %p1098_p12 = por %p1097_p11, %p1096_p10 }
0x11ef   : > { %p1094_p9 = pneg %p1093_p8 }
0x11f1   : > { %p1099_p13 = pnand %p1098_p12, %p1094_p9 }
0x11f3   : > { %1102 = shalt.err (!%p1099_p13)
}
0x11f4   : > { %s1179_s4 = smov 128   ;;  %s1180_s5 = smov 8  }
0x11f5   : > { %974 = dma.vmem_to_hbm [thread:$0]  (%p1234_p5), %s1587_s14, 384, %s1585_s22, %s1593_s13, %s1179_s4, %s1179_s4, %s1180_s5  }
0x11f6 PF: > { %p980_p0 = scmp.ge.s32.totalorder %s1153_s12, 2  ;;  %s858_s6 = sand.u32 1, %s1141_s9  }
0x11f7   : > { %s859_s7 = scalar_lea.sflag [#allocation3], %s858_s6 }
0x11f8   : > { %p977_p1 = pnand %p980_p0, %p1238_p6 }
0x11fa   : > { %p978_p2 = pneg %p977_p1 }
0x11fc   : > { %1136 = dma.done.wait (%p978_p2), %s859_s7, 384  }
0x11fd   : > { %1138 = vsyncadd (%p978_p2), %s859_s7, 4294966912  ;;  %p13_p3 = scmp.ge.s32.totalorder %s1221_s15, 4   ;;  %s1640_s9 = smov %s1145_s10 }
0x11fe   : > { %s1641_s10 = smov %s1149_s11  ;;  %s1642_s11 = smov %s1232_s18 }
0x11ff   : > { %s1643_s12 = smov %s1221_s15  ;;  %15 = sbr.rel (!%p13_p3) target bundleno = 3 (0x3), region = 91 }
0x1204   :  { %871 = vsyncpa [#allocation3], 1 }
0x1205   :  { %873 = vsyncpa [#allocation3 + $0x1], 1 }

</bundles_post_ra>
